<compile_context>
chip_gen: v6e
topology: v6e:2x2x1
jax: 0.10.0
libtpu: 0.0.40
codegen_flags: <defaults>
</compile_context>

<pallas_src>
import math
import functools

import jax
import jax.numpy as jnp
from jax import lax
from jax.experimental import pallas as pl
from jax.experimental.pallas import tpu as pltpu


def _round_up(x, m):
    return ((x + m - 1) // m) * m


# ---------------------------------------------------------------------------
# Per-generation hardware knobs (TensorCore count, VMEM budget, lane padding).
# ---------------------------------------------------------------------------
def _tpu_generation():
    try:
        kind = jax.devices()[0].device_kind.lower()
    except Exception:
        return "unknown"
    if "v7" in kind:
        return "v7x"
    if "v6" in kind:
        return "v6e"
    if "v5 lite" in kind or "v5e" in kind or "v5litepod" in kind:
        return "v5e"
    if "v5p" in kind or "v5" in kind:
        return "v5p"
    if "v4" in kind:
        return "v4"
    return "unknown"


def _hw_config():
    gen = _tpu_generation()
    # TensorCores a single pallas_call can spread a "parallel" grid axis over.
    num_cores = 2 if gen in ("v7x", "v5p", "v4") else 1
    # VMEM request with headroom below the physical size (v7x has only 64 MiB).
    if gen == "v7x":
        vmem_limit = 52 * 1024 * 1024
    elif gen in ("v6e", "v5e", "v5p", "v4"):
        vmem_limit = 100 * 1024 * 1024
    else:
        vmem_limit = 64 * 1024 * 1024
    try:  # refine with the real capacity when the query is available
        cap = int(pltpu.get_tpu_info().vmem_capacity_bytes)
        vmem_limit = min(vmem_limit, int(cap * 0.82))
    except Exception:
        pass
    # v6e/v7x MXUs are 256x256: pad E / per-gate H to 256 lanes there.
    lane = 256 if gen in ("v6e", "v7x") else 128
    return gen, num_cores, vmem_limit, lane


def _maybe_single_buffered(block_shape, index_map):
    """Single-buffer constant-index blocks when the API supports it (saves VMEM)."""
    buffered = getattr(pl, "Buffered", None)
    if buffered is not None:
        try:
            return pl.BlockSpec(block_shape, index_map, pipeline_mode=buffered(1))
        except TypeError:
            pass
    return pl.BlockSpec(block_shape, index_map)


# ---------------------------------------------------------------------------
# Explicit VMEM budget math for the GRU kernel -> time_block / unroll choice.
# ---------------------------------------------------------------------------
def _gru_vmem_bytes(ts, tb, ep, hp, nbuf_const):
    gp = 3 * hp
    return (2 * ts * tb * ep * 2          # x chunk, double-buffered, bf16
            + 2 * ts * tb * hp * 2        # y chunk, double-buffered, bf16
            + nbuf_const * tb * hp * 4    # h0 (f32)
            + nbuf_const * ep * gp * 2    # w_ih (bf16)
            + nbuf_const * hp * gp * 2    # w_hh (bf16)
            + nbuf_const * (gp + hp) * 4  # biases (f32)
            + ts * tb * gp * 2            # gi scratch (bf16)
            + tb * hp * 4)                # carried hidden state (f32)


def _pick_time_block(S, tb, ep, hp, vmem_limit):
    nbuf_const = 1 if getattr(pl, "Buffered", None) is not None else 2
    budget = int(vmem_limit * 0.8)
    cap = _round_up(max(S, 1), 8)
    for ts in (512, 256, 128, 64, 32, 16, 8):
        if ts > cap:
            continue
        if _gru_vmem_bytes(ts, tb, ep, hp, nbuf_const) <= budget:
            return ts
    return 8


def _pick_unroll(ts, hp):
    # Larger H -> larger per-step intermediates -> less unroll (vreg pressure).
    if hp <= 256:
        u = 4
    elif hp <= 1024:
        u = 2
    else:
        u = 1
    return max(1, min(u, ts))


# ---------------------------------------------------------------------------
# GRU single layer.  Grid = (batch_tiles, time_chunks); hidden state carried
# in VMEM scratch across time chunks.  Gate order follows PyTorch: [r, z, n].
# ---------------------------------------------------------------------------
def gru_layer_kernel(x_ref, h0_ref, wih_ref, whh_ref, bgi_ref, bhn_ref,
                     y_ref, gi_sc, h_sc, *, unroll):
    # x_ref  : (TS, TB, E_pad)      bf16   current time chunk, time-major
    # h0_ref : (TB, H_pad)          f32
    # wih_ref: (E_pad, 3*H_pad)     bf16   (per-gate padded columns)
    # whh_ref: (H_pad, 3*H_pad)     bf16
    # bgi_ref: (1, 3*H_pad)         f32    b_ih + [b_hr, b_hz, 0]
    # bhn_ref: (1, H_pad)           f32    b_hn (n-gate hidden bias)
    # y_ref  : (TS, TB, H_pad)      bf16
    # gi_sc  : (TS, TB, 3*H_pad)    bf16 scratch (hoisted input projection)
    # h_sc   : (TB, H_pad)          f32  scratch (hidden state, carried)
    ts, tb, ep = x_ref.shape
    Hp = h0_ref.shape[1]

    # Initialize the carried hidden state on the first time chunk only.
    @pl.when(pl.program_id(1) == 0)
    def _():
        h_sc[...] = h0_ref[...]

    # Hoisted, time-independent input projection for the whole chunk:
    # one (TS*TB, E) @ (E, 3H) GEMM; b_ih and the r/z hidden biases folded in.
    # Stored in bf16 to halve the dominant VMEM scratch + its store traffic.
    x2d = x_ref[...].reshape(ts * tb, ep)
    gi = jnp.dot(x2d, wih_ref[...],
                 preferred_element_type=jnp.float32) + bgi_ref[...]
    gi_sc[...] = gi.reshape(ts, tb, 3 * Hp).astype(gi_sc.dtype)

    w_hh = whh_ref[...]
    # Hoist the bias broadcast out of the serial loop (JAX does not CSE it).
    b_hn = jnp.broadcast_to(bhn_ref[...], (tb, Hp))

    def one_step(t, h_prev):
        gi_t = gi_sc[t].astype(jnp.float32)                   # (TB, 3H)
        gh = jnp.dot(h_prev.astype(w_hh.dtype), w_hh,
                     preferred_element_type=jnp.float32)      # (TB, 3H), no bias
        r = jax.nn.sigmoid(gi_t[:, 0:Hp] + gh[:, 0:Hp])
        z = jax.nn.sigmoid(gi_t[:, Hp:2 * Hp] + gh[:, Hp:2 * Hp])
        n = jnp.tanh(gi_t[:, 2 * Hp:3 * Hp]
                     + r * (gh[:, 2 * Hp:3 * Hp] + b_hn))
        h_new = (1.0 - z) * n + z * h_prev
        y_ref[t] = h_new.astype(y_ref.dtype)
        return h_new

    h = h_sc[...]
    n_blocks = ts // unroll

    def unrolled_block(i, h_carry):
        base = i * unroll
        for u in range(unroll):                 # manual unroll: LLO visibility
            h_carry = one_step(base + u, h_carry)
        return h_carry

    if n_blocks > 0:
        h = lax.fori_loop(0, n_blocks, unrolled_block, h)
    for t in range(n_blocks * unroll, ts):      # static remainder
        h = one_step(t, h)

    h_sc[...] = h


def gru_layer(x, h0, w_ih, w_hh, b_gi, b_hn, *, time_block, batch_tile,
              unroll, vmem_limit):
    """x: (S_pad, B_pad, E_pad) bf16 time-major.  Returns (S_pad, B_pad, H_pad) bf16."""
    S_pad, B_pad, E_pad = x.shape
    H_pad = h0.shape[1]
    Gp = 3 * H_pad
    ts, tb = time_block, batch_tile
    assert S_pad % ts == 0 and B_pad % tb == 0 and tb % 8 == 0
    nb, ns = B_pad // tb, S_pad // ts

    flops = 2 * S_pad * B_pad * (E_pad + H_pad) * Gp
    cost = pl.CostEstimate(
        flops=int(flops),
        transcendentals=int(3 * S_pad * B_pad * H_pad),
        bytes_accessed=int(x.size * 2 + S_pad * B_pad * H_pad * 2
                           + w_ih.size * 2 + w_hh.size * 2
                           + (b_gi.size + b_hn.size + h0.size) * 4))

    kernel = functools.partial(gru_layer_kernel, unroll=unroll)
    return pl.pallas_call(
        kernel,
        out_shape=jax.ShapeDtypeStruct((S_pad, B_pad, H_pad), jnp.bfloat16),
        grid_spec=pltpu.PrefetchScalarGridSpec(
            num_scalar_prefetch=0,
            grid=(nb, ns),
            in_specs=[
                pl.BlockSpec((ts, tb, E_pad), lambda b, s: (s, b, 0)),
                _maybe_single_buffered((tb, H_pad), lambda b, s: (b, 0)),
                _maybe_single_buffered((E_pad, Gp), lambda b, s: (0, 0)),
                _maybe_single_buffered((H_pad, Gp), lambda b, s: (0, 0)),
                _maybe_single_buffered((1, Gp), lambda b, s: (0, 0)),
                _maybe_single_buffered((1, H_pad), lambda b, s: (0, 0)),
            ],
            out_specs=pl.BlockSpec((ts, tb, H_pad), lambda b, s: (s, b, 0)),
            scratch_shapes=[pltpu.VMEM((ts, tb, Gp), jnp.bfloat16),
                            pltpu.VMEM((tb, H_pad), jnp.float32)],
        ),
        compiler_params=pltpu.CompilerParams(
            dimension_semantics=("parallel", "arbitrary"),
            vmem_limit_bytes=int(vmem_limit)),
        cost_estimate=cost,
    )(x, h0, w_ih, w_hh, b_gi, b_hn)


# ---------------------------------------------------------------------------
# Dense (Linear) output projection: tiled (M_tiles, V_tiles) GEMM.  The weight
# tile is re-streamed per M tile, so tm is grown as large as the budget allows.
# ---------------------------------------------------------------------------
def dense_kernel(x_ref, w_ref, b_ref, o_ref):
    o_ref[...] = (jnp.dot(x_ref[...], w_ref[...],
                          preferred_element_type=jnp.float32)
                  + b_ref[...]).astype(o_ref.dtype)


def dense(x2d, w, b, *, vmem_limit, out_dtype=jnp.float32):
    M, H_pad = x2d.shape
    V_pad = w.shape[1]
    out_bytes = jnp.dtype(out_dtype).itemsize
    budget = int(vmem_limit * 0.8)

    tv = next(t for t in (512, 256, 128) if V_pad % t == 0)

    def est(tm):
        return (2 * tm * H_pad * 2 + 2 * H_pad * tv * 2
                + 2 * tv * 4 + 2 * tm * tv * out_bytes)

    tm = 8
    for cand in (4096, 2048, 1024, 512, 256, 128, 64, 32, 16, 8):
        if M % cand == 0 and est(cand) <= budget:
            tm = cand
            break

    cost = pl.CostEstimate(
        flops=int(2 * M * H_pad * V_pad), transcendentals=0,
        bytes_accessed=int(M * H_pad * 2 + (M // tm) * H_pad * V_pad * 2
                           + M * V_pad * out_bytes + V_pad * 4))
    return pl.pallas_call(
        dense_kernel,
        out_shape=jax.ShapeDtypeStruct((M, V_pad), out_dtype),
        grid_spec=pltpu.PrefetchScalarGridSpec(
            num_scalar_prefetch=0,
            grid=(M // tm, V_pad // tv),
            in_specs=[
                pl.BlockSpec((tm, H_pad), lambda i, j: (i, 0)),
                pl.BlockSpec((H_pad, tv), lambda i, j: (0, j)),
                pl.BlockSpec((1, tv), lambda i, j: (0, j)),
            ],
            out_specs=pl.BlockSpec((tm, tv), lambda i, j: (i, j)),
        ),
        compiler_params=pltpu.CompilerParams(
            dimension_semantics=("parallel", "parallel"),
            vmem_limit_bytes=int(vmem_limit)),
        cost_estimate=cost,
    )(x2d, w, b)


# ---------------------------------------------------------------------------
# Padding helpers.  The 3H gate axis is padded per gate so each gate slice
# starts at a lane-aligned offset; zeros keep padded hidden units exactly 0.
# ---------------------------------------------------------------------------
def _pad_gate_matrix(w, in_dim, in_pad, H, H_pad):
    parts = [jnp.pad(w[:, g * H:(g + 1) * H],
                     ((0, in_pad - in_dim), (0, H_pad - H))) for g in range(3)]
    return jnp.concatenate(parts, axis=1)


def _pad_gate_bias(bv, H, H_pad):
    parts = [jnp.pad(bv[:, g * H:(g + 1) * H], ((0, 0), (0, H_pad - H)))
             for g in range(3)]
    return jnp.concatenate(parts, axis=1)


# ---------------------------------------------------------------------------
# Full forward: embedding gather (plain JAX, directly time-major) -> n_layers
# chunked GRU kernels -> bf16 layout fixup -> tiled dense projection kernel.
# ---------------------------------------------------------------------------
def rnn_decoder_forward(params, target, memory, *, n_layers, embedding_dim,
                        hidden_size, vocab_dim, time_block=None, unroll=None):
    B, S = target.shape
    E, H, V = embedding_dim, hidden_size, vocab_dim

    gen, num_cores, vmem_limit, lane = _hw_config()

    B_pad = _round_up(B, 8)
    E_pad = _round_up(E, lane)
    H_pad = _round_up(H, lane)
    V_pad = _round_up(V, 128)

    # Megacore batch split only where >1 TensorCore exists (v7x/v5p/v4); on
    # single-core v5e/v6e a split would just shrink the GEMM M dim.
    tb = B_pad // 2 if (num_cores > 1 and B_pad % 16 == 0) else B_pad

    ts = time_block if time_block is not None else _pick_time_block(
        S, tb, max(E_pad, H_pad), H_pad, vmem_limit)
    S_pad = _round_up(S, ts)
    if unroll is None:
        unroll = _pick_unroll(ts, H_pad)

    # Gather directly into time-major (S, B, E): no activation transpose.
    emb = jnp.take(params["embedding"], target.T, axis=0)            # (S, B, E)
    x = jnp.pad(emb, ((0, S_pad - S), (0, B_pad - B), (0, E_pad - E)))
    x = x.astype(jnp.bfloat16)

    # TODO(synk): inter-layer dropout is training-mode only -> omitted (eval).
    # TODO(synk): fuse the n_layers GRU calls into one pallas_call to keep the
    #             inter-layer (S,B,H) bf16 activations in VMEM (matters most on v5e).
    # TODO(synk): optional int8 weight quantization for v5e/v6e MXUs (not v7x).
    for l in range(n_layers):
        in_dim = E if l == 0 else H
        in_pad = E_pad if l == 0 else H_pad
        w_ih = _pad_gate_matrix(params[f"w_ih_{l}"], in_dim, in_pad,
                                H, H_pad).astype(jnp.bfloat16)
        w_hh = _pad_gate_matrix(params[f"w_hh_{l}"], H, H_pad,
                                H, H_pad).astype(jnp.bfloat16)
        b_ih = _pad_gate_bias(params[f"b_ih_{l}"], H, H_pad)
        b_hh = _pad_gate_bias(params[f"b_hh_{l}"], H, H_pad)
        # Fold r/z-gate hidden biases into the hoisted input projection; only
        # the n-gate hidden bias (multiplied by r) stays in the time loop.
        b_gi = b_ih + b_hh.at[:, 2 * H_pad:].set(0.0)
        b_hn = b_hh[:, 2 * H_pad:]
        h0 = jnp.pad(memory[l], ((0, B_pad - B), (0, H_pad - H)))
        x = gru_layer(x, h0, w_ih, w_hh, b_gi, b_hn,
                      time_block=ts, batch_tile=tb, unroll=unroll,
                      vmem_limit=vmem_limit)                          # bf16

    # Fix the (S,B)->(B,S) layout on the cheap bf16 activations (not on the f32
    # logits) and slice away S/B padding before the vocab projection.
    y = x[:S, :B, :]                                                  # (S, B, H_pad)
    y = jnp.transpose(y, (1, 0, 2)).reshape(B * S, H_pad)             # batch-first
    M_pad = _round_up(B * S, 8)
    y = jnp.pad(y, ((0, M_pad - B * S), (0, 0)))

    w = jnp.pad(params["dense_w"],
                ((0, H_pad - H), (0, V_pad - V))).astype(jnp.bfloat16)
    bb = jnp.pad(params["dense_b"], ((0, 0), (0, V_pad - V)))
    logits_p = dense(y, w, bb, vmem_limit=vmem_limit)                 # (M_pad, V_pad)
    return logits_p[:B * S, :V].reshape(B, S, V)                      # (B, S, V)


# ---------------------------------------------------------------------------
# Deterministic parameter init (shapes match nn.Embedding / nn.GRU / nn.Linear).
# Weights stored pre-transposed for right-multiplication: (in, 3H) / (H, V).
# ---------------------------------------------------------------------------
def init_params(key, vocab_dim, embedding_dim, hidden_size, n_layers):
    params = {}
    k = 1.0 / math.sqrt(hidden_size)
    keys = jax.random.split(key, 2 + 4 * n_layers + 2)
    ki = iter(keys)

    params["embedding"] = jax.random.normal(
        next(ki), (vocab_dim, embedding_dim), jnp.float32)

    for l in range(n_layers):
        in_dim = embedding_dim if l == 0 else hidden_size
        params[f"w_ih_{l}"] = jax.random.uniform(
            next(ki), (in_dim, 3 * hidden_size), jnp.float32, -k, k)
        params[f"w_hh_{l}"] = jax.random.uniform(
            next(ki), (hidden_size, 3 * hidden_size), jnp.float32, -k, k)
        params[f"b_ih_{l}"] = jax.random.uniform(
            next(ki), (1, 3 * hidden_size), jnp.float32, -k, k)
        params[f"b_hh_{l}"] = jax.random.uniform(
            next(ki), (1, 3 * hidden_size), jnp.float32, -k, k)

    params["dense_w"] = jax.random.uniform(
        next(ki), (hidden_size, vocab_dim), jnp.float32, -k, k)
    params["dense_b"] = jax.random.uniform(
        next(ki), (1, vocab_dim), jnp.float32, -k, k)
    return params


# ---------------------------------------------------------------------------
# Pure-JAX reference mirroring the kernel's precision choices (bf16 matmul
# inputs, f32 accumulation, bf16-rounded hoisted input projection).
# ---------------------------------------------------------------------------
def reference_forward(params, target, memory, n_layers, hidden_size):
    H = hidden_size
    bf16 = jnp.bfloat16
    x = jnp.take(params["embedding"], target.T, axis=0)               # (S, B, E)
    for l in range(n_layers):
        w_ih = params[f"w_ih_{l}"].astype(bf16)
        w_hh = params[f"w_hh_{l}"].astype(bf16)
        b_ih, b_hh = params[f"b_ih_{l}"], params[f"b_hh_{l}"]
        b_gi = b_ih + b_hh.at[:, 2 * H:].set(0.0)
        b_hn = b_hh[:, 2 * H:]
        h = memory[l]
        ys = []
        for t in range(x.shape[0]):
            gi = jnp.dot(x[t].astype(bf16), w_ih,
                         preferred_element_type=jnp.float32) + b_gi
            gi = gi.astype(bf16).astype(jnp.float32)   # gi scratch is bf16 in-kernel
            gh = jnp.dot(h.astype(bf16), w_hh, preferred_element_type=jnp.float32)
            r = jax.nn.sigmoid(gi[:, 0:H] + gh[:, 0:H])
            z = jax.nn.sigmoid(gi[:, H:2 * H] + gh[:, H:2 * H])
            n = jnp.tanh(gi[:, 2 * H:3 * H] + r * (gh[:, 2 * H:3 * H] + b_hn))
            h = (1.0 - z) * n + z * h
            ys.append(h)
        x = jnp.stack(ys, axis=0)                                     # (S, B, H)
    y = jnp.transpose(x, (1, 0, 2))                                   # (B, S, H)
    return jnp.dot(y.astype(bf16), params["dense_w"].astype(bf16),
                   preferred_element_type=jnp.float32) + params["dense_b"]


if __name__ == "__main__":
    vocab_dim = 32
    embedding_dim = 16
    hidden_size = 32
    n_layers = 2
    B, S = 4, 8

    key = jax.random.PRNGKey(0)
    k_param, k_tgt, k_mem = jax.random.split(key, 3)

    params = init_params(k_param, vocab_dim, embedding_dim, hidden_size, n_layers)
    target = jax.random.randint(k_tgt, (B, S), 0, vocab_dim, dtype=jnp.int32)
    memory = jax.random.normal(k_mem, (n_layers, B, hidden_size), jnp.float32)

    fwd = jax.jit(functools.partial(
        rnn_decoder_forward, n_layers=n_layers, embedding_dim=embedding_dim,
        hidden_size=hidden_size, vocab_dim=vocab_dim))
    logits = fwd(params, target, memory)
    jax.block_until_ready(logits)

    ref = reference_forward(params, target, memory, n_layers, hidden_size)
    assert logits.shape == (B, S, vocab_dim), logits.shape
    err = float(jnp.max(jnp.abs(logits - ref)))
    assert jnp.allclose(logits, ref, atol=5e-3, rtol=5e-3), f"mismatch {err}"

    print("KERNEL_OK")
</pallas_src>

<mosaic_0001>
module attributes {stable_mosaic.version = 11 : i64} {
  func.func @gru_layer_kernel(%arg0: i32, %arg1: i32, %arg2: memref<8x8x128xbf16, #tpu.memory_space<vmem>>, %arg3: memref<8x128xf32, #tpu.memory_space<vmem>>, %arg4: memref<128x384xbf16, #tpu.memory_space<vmem>>, %arg5: memref<128x384xbf16, #tpu.memory_space<vmem>>, %arg6: memref<1x384xf32, #tpu.memory_space<vmem>>, %arg7: memref<1x128xf32, #tpu.memory_space<vmem>>, %arg8: memref<8x8x128xbf16, #tpu.memory_space<vmem>>, %arg9: memref<8x8x384xbf16, #tpu.memory_space<vmem>>, %arg10: memref<8x128xf32, #tpu.memory_space<vmem>>) attributes {dimension_semantics = [#tpu.dimension_semantics<parallel>, #tpu.dimension_semantics<arbitrary>], iteration_bounds = array<i64: 1, 1>, scalar_prefetch = 0 : i64, scratch_operands = 2 : i64, tpu.core_type = #tpu.core_type<tc>, window_params = [{transform_indices = @transform_0, window_bounds = array<i64: 8, 8, 128>}, {pipeline_mode = #tpu.pipeline_mode<synchronous>, transform_indices = @transform_1, window_bounds = array<i64: 8, 128>}, {pipeline_mode = #tpu.pipeline_mode<synchronous>, transform_indices = @transform_2, window_bounds = array<i64: 128, 384>}, {pipeline_mode = #tpu.pipeline_mode<synchronous>, transform_indices = @transform_3, window_bounds = array<i64: 128, 384>}, {pipeline_mode = #tpu.pipeline_mode<synchronous>, transform_indices = @transform_4, window_bounds = array<i64: 1, 384>}, {pipeline_mode = #tpu.pipeline_mode<synchronous>, transform_indices = @transform_5, window_bounds = array<i64: 1, 128>}, {transform_indices = @transform_6, window_bounds = array<i64: 8, 8, 128>}]} {
    %c0_i32 = arith.constant 0 : i32
    %0 = arith.cmpi eq, %arg1, %c0_i32 : i32
    %1 = arith.extui %0 : i1 to i32
    %c0_i32_0 = arith.constant 0 : i32
    %2 = arith.cmpi ne, %1, %c0_i32_0 : i32
    scf.if %2 {
      %c0_20 = arith.constant 0 : index
      %c0_21 = arith.constant 0 : index
      %21 = vector.load %arg3[%c0_20, %c0_21] : memref<8x128xf32, #tpu.memory_space<vmem>>, vector<8x128xf32>
      %c0_22 = arith.constant 0 : index
      %c0_23 = arith.constant 0 : index
      %22 = vector.load %arg10[%c0_22, %c0_23] : memref<8x128xf32, #tpu.memory_space<vmem>>, vector<8x128xf32>
      tpu.vector_store %arg10[%c0_22, %c0_23], %21 {strides = array<i32>} : memref<8x128xf32, #tpu.memory_space<vmem>>, vector<8x128xf32>,
    } else {
    }
    %c0 = arith.constant 0 : index
    %c0_1 = arith.constant 0 : index
    %c0_2 = arith.constant 0 : index
    %3 = vector.load %arg2[%c0, %c0_1, %c0_2] : memref<8x8x128xbf16, #tpu.memory_space<vmem>>, vector<8x8x128xbf16>
    %4 = vector.shape_cast %3 : vector<8x8x128xbf16> to vector<64x128xbf16>
    %c0_3 = arith.constant 0 : index
    %c0_4 = arith.constant 0 : index
    %5 = vector.load %arg4[%c0_3, %c0_4] : memref<128x384xbf16, #tpu.memory_space<vmem>>, vector<128x384xbf16>
    %cst = arith.constant dense<0.000000e+00> : vector<64x384xf32>
    %6 = tpu.matmul %4, %5, %cst {dimension_numbers = #tpu.dot_dimension_numbers<[1], [0], [0], [1], [0, 0, 1, 1], [], []>} : vector<64x128xbf16>, vector<128x384xbf16>, vector<64x384xf32> -> vector<64x384xf32>
    %c0_5 = arith.constant 0 : index
    %c0_6 = arith.constant 0 : index
    %7 = vector.load %arg6[%c0_5, %c0_6] : memref<1x384xf32, #tpu.memory_space<vmem>>, vector<1x384xf32>
    %8 = vector.broadcast %7 : vector<1x384xf32> to vector<64x384xf32>
    %9 = arith.addf %6, %8 : vector<64x384xf32>
    %10 = vector.shape_cast %9 : vector<64x384xf32> to vector<8x8x384xf32>
    %11 = arith.truncf %10 : vector<8x8x384xf32> to vector<8x8x384xbf16>
    %c0_7 = arith.constant 0 : index
    %c0_8 = arith.constant 0 : index
    %c0_9 = arith.constant 0 : index
    %12 = vector.load %arg9[%c0_7, %c0_8, %c0_9] : memref<8x8x384xbf16, #tpu.memory_space<vmem>>, vector<8x8x384xbf16>
    tpu.vector_store %arg9[%c0_7, %c0_8, %c0_9], %11 {strides = array<i32>} : memref<8x8x384xbf16, #tpu.memory_space<vmem>>, vector<8x8x384xbf16>,
    %c0_10 = arith.constant 0 : index
    %c0_11 = arith.constant 0 : index
    %13 = vector.load %arg5[%c0_10, %c0_11] : memref<128x384xbf16, #tpu.memory_space<vmem>>, vector<128x384xbf16>
    %c0_12 = arith.constant 0 : index
    %c0_13 = arith.constant 0 : index
    %14 = vector.load %arg7[%c0_12, %c0_13] : memref<1x128xf32, #tpu.memory_space<vmem>>, vector<1x128xf32>
    %15 = vector.shape_cast %14 : vector<1x128xf32> to vector<1x128xf32>
    %16 = vector.broadcast %15 : vector<1x128xf32> to vector<8x128xf32>
    %c0_14 = arith.constant 0 : index
    %c0_15 = arith.constant 0 : index
    %17 = vector.load %arg10[%c0_14, %c0_15] : memref<8x128xf32, #tpu.memory_space<vmem>>, vector<8x128xf32>
    %c0_i32_16 = arith.constant 0 : i32
    %c2_i32 = arith.constant 2 : i32
    %18 = arith.addi %c0_i32_16, %c2_i32 : i32
    %c1_i32 = arith.constant 1 : i32
    %19 = scf.for %arg11 = %c0_i32_16 to %18 step %c1_i32 iter_args(%arg12 = %17) -> (vector<8x128xf32>)  : i32 {
      %c4_i32 = arith.constant 4 : i32
      %21 = arith.muli %arg11, %c4_i32 : i32
      %c0_i32_20 = arith.constant 0 : i32
      %22 = arith.addi %21, %c0_i32_20 : i32
      %23 = arith.index_cast %22 : i32 to index
      %c0_21 = arith.constant 0 : index
      %c0_22 = arith.constant 0 : index
      %24 = vector.load %arg9[%23, %c0_21, %c0_22] : memref<8x8x384xbf16, #tpu.memory_space<vmem>>, vector<1x8x384xbf16>
      %25 = vector.shape_cast %24 : vector<1x8x384xbf16> to vector<8x384xbf16>
      %26 = arith.extf %25 : vector<8x384xbf16> to vector<8x384xf32>
      %27 = arith.truncf %arg12 : vector<8x128xf32> to vector<8x128xbf16>
      %cst_23 = arith.constant dense<0.000000e+00> : vector<8x384xf32>
      %28 = tpu.matmul %27, %13, %cst_23 {dimension_numbers = #tpu.dot_dimension_numbers<[1], [0], [0], [1], [0, 0, 1, 1], [], []>} : vector<8x128xbf16>, vector<128x384xbf16>, vector<8x384xf32> -> vector<8x384xf32>
      %29 = vector.extract_strided_slice %26 {offsets = [0, 0], sizes = [8, 128], strides = [1, 1]} : vector<8x384xf32> to vector<8x128xf32>
      %30 = vector.extract_strided_slice %28 {offsets = [0, 0], sizes = [8, 128], strides = [1, 1]} : vector<8x384xf32> to vector<8x128xf32>
      %31 = arith.addf %29, %30 : vector<8x128xf32>
      %32 = arith.negf %31 : vector<8x128xf32>
      %33 = math.exp %32 : vector<8x128xf32>
      %cst_24 = arith.constant 1.000000e+00 : f32
      %34 = vector.broadcast %cst_24 : f32 to vector<8x128xf32>
      %35 = arith.addf %34, %33 : vector<8x128xf32>
      %36 = arith.divf %34, %35 : vector<8x128xf32>
      %37 = vector.extract_strided_slice %26 {offsets = [0, 128], sizes = [8, 128], strides = [1, 1]} : vector<8x384xf32> to vector<8x128xf32>
      %38 = vector.extract_strided_slice %28 {offsets = [0, 128], sizes = [8, 128], strides = [1, 1]} : vector<8x384xf32> to vector<8x128xf32>
      %39 = arith.addf %37, %38 : vector<8x128xf32>
      %40 = arith.negf %39 : vector<8x128xf32>
      %41 = math.exp %40 : vector<8x128xf32>
      %cst_25 = arith.constant 1.000000e+00 : f32
      %42 = vector.broadcast %cst_25 : f32 to vector<8x128xf32>
      %43 = arith.addf %42, %41 : vector<8x128xf32>
      %44 = arith.divf %42, %43 : vector<8x128xf32>
      %45 = vector.extract_strided_slice %26 {offsets = [0, 256], sizes = [8, 128], strides = [1, 1]} : vector<8x384xf32> to vector<8x128xf32>
      %46 = vector.extract_strided_slice %28 {offsets = [0, 256], sizes = [8, 128], strides = [1, 1]} : vector<8x384xf32> to vector<8x128xf32>
      %47 = arith.addf %46, %16 : vector<8x128xf32>
      %48 = arith.mulf %36, %47 : vector<8x128xf32>
      %49 = arith.addf %45, %48 : vector<8x128xf32>
      %50 = math.tanh %49 : vector<8x128xf32>
      %cst_26 = arith.constant 1.000000e+00 : f32
      %51 = vector.broadcast %cst_26 : f32 to vector<8x128xf32>
      %52 = arith.subf %51, %44 : vector<8x128xf32>
      %53 = arith.mulf %52, %50 : vector<8x128xf32>
      %54 = arith.mulf %44, %arg12 : vector<8x128xf32>
      %55 = arith.addf %53, %54 : vector<8x128xf32>
      %56 = arith.truncf %55 : vector<8x128xf32> to vector<8x128xbf16>
      %57 = arith.index_cast %22 : i32 to index
      %c0_27 = arith.constant 0 : index
      %c0_28 = arith.constant 0 : index
      %58 = vector.load %arg8[%57, %c0_27, %c0_28] : memref<8x8x128xbf16, #tpu.memory_space<vmem>>, vector<1x8x128xbf16>
      %59 = vector.shape_cast %58 : vector<1x8x128xbf16> to vector<8x128xbf16>
      %60 = vector.shape_cast %56 : vector<8x128xbf16> to vector<1x8x128xbf16>
      tpu.vector_store %arg8[%57, %c0_27, %c0_28], %60 {strides = array<i32>} : memref<8x8x128xbf16, #tpu.memory_space<vmem>>, vector<1x8x128xbf16>,
      %c1_i32_29 = arith.constant 1 : i32
      %61 = arith.addi %21, %c1_i32_29 : i32
      %62 = arith.index_cast %61 : i32 to index
      %c0_30 = arith.constant 0 : index
      %c0_31 = arith.constant 0 : index
      %63 = vector.load %arg9[%62, %c0_30, %c0_31] : memref<8x8x384xbf16, #tpu.memory_space<vmem>>, vector<1x8x384xbf16>
      %64 = vector.shape_cast %63 : vector<1x8x384xbf16> to vector<8x384xbf16>
      %65 = arith.extf %64 : vector<8x384xbf16> to vector<8x384xf32>
      %66 = arith.truncf %55 : vector<8x128xf32> to vector<8x128xbf16>
      %cst_32 = arith.constant dense<0.000000e+00> : vector<8x384xf32>
      %67 = tpu.matmul %66, %13, %cst_32 {dimension_numbers = #tpu.dot_dimension_numbers<[1], [0], [0], [1], [0, 0, 1, 1], [], []>} : vector<8x128xbf16>, vector<128x384xbf16>, vector<8x384xf32> -> vector<8x384xf32>
      %68 = vector.extract_strided_slice %65 {offsets = [0, 0], sizes = [8, 128], strides = [1, 1]} : vector<8x384xf32> to vector<8x128xf32>
      %69 = vector.extract_strided_slice %67 {offsets = [0, 0], sizes = [8, 128], strides = [1, 1]} : vector<8x384xf32> to vector<8x128xf32>
      %70 = arith.addf %68, %69 : vector<8x128xf32>
      %71 = arith.negf %70 : vector<8x128xf32>
      %72 = math.exp %71 : vector<8x128xf32>
      %cst_33 = arith.constant 1.000000e+00 : f32
      %73 = vector.broadcast %cst_33 : f32 to vector<8x128xf32>
      %74 = arith.addf %73, %72 : vector<8x128xf32>
      %75 = arith.divf %73, %74 : vector<8x128xf32>
      %76 = vector.extract_strided_slice %65 {offsets = [0, 128], sizes = [8, 128], strides = [1, 1]} : vector<8x384xf32> to vector<8x128xf32>
      %77 = vector.extract_strided_slice %67 {offsets = [0, 128], sizes = [8, 128], strides = [1, 1]} : vector<8x384xf32> to vector<8x128xf32>
      %78 = arith.addf %76, %77 : vector<8x128xf32>
      %79 = arith.negf %78 : vector<8x128xf32>
      %80 = math.exp %79 : vector<8x128xf32>
      %cst_34 = arith.constant 1.000000e+00 : f32
      %81 = vector.broadcast %cst_34 : f32 to vector<8x128xf32>
      %82 = arith.addf %81, %80 : vector<8x128xf32>
      %83 = arith.divf %81, %82 : vector<8x128xf32>
      %84 = vector.extract_strided_slice %65 {offsets = [0, 256], sizes = [8, 128], strides = [1, 1]} : vector<8x384xf32> to vector<8x128xf32>
      %85 = vector.extract_strided_slice %67 {offsets = [0, 256], sizes = [8, 128], strides = [1, 1]} : vector<8x384xf32> to vector<8x128xf32>
      %86 = arith.addf %85, %16 : vector<8x128xf32>
      %87 = arith.mulf %75, %86 : vector<8x128xf32>
      %88 = arith.addf %84, %87 : vector<8x128xf32>
      %89 = math.tanh %88 : vector<8x128xf32>
      %cst_35 = arith.constant 1.000000e+00 : f32
      %90 = vector.broadcast %cst_35 : f32 to vector<8x128xf32>
      %91 = arith.subf %90, %83 : vector<8x128xf32>
      %92 = arith.mulf %91, %89 : vector<8x128xf32>
      %93 = arith.mulf %83, %55 : vector<8x128xf32>
      %94 = arith.addf %92, %93 : vector<8x128xf32>
      %95 = arith.truncf %94 : vector<8x128xf32> to vector<8x128xbf16>
      %96 = arith.index_cast %61 : i32 to index
      %c0_36 = arith.constant 0 : index
      %c0_37 = arith.constant 0 : index
      %97 = vector.load %arg8[%96, %c0_36, %c0_37] : memref<8x8x128xbf16, #tpu.memory_space<vmem>>, vector<1x8x128xbf16>
      %98 = vector.shape_cast %97 : vector<1x8x128xbf16> to vector<8x128xbf16>
      %99 = vector.shape_cast %95 : vector<8x128xbf16> to vector<1x8x128xbf16>
      tpu.vector_store %arg8[%96, %c0_36, %c0_37], %99 {strides = array<i32>} : memref<8x8x128xbf16, #tpu.memory_space<vmem>>, vector<1x8x128xbf16>,
      %c2_i32_38 = arith.constant 2 : i32
      %100 = arith.addi %21, %c2_i32_38 : i32
      %101 = arith.index_cast %100 : i32 to index
      %c0_39 = arith.constant 0 : index
      %c0_40 = arith.constant 0 : index
      %102 = vector.load %arg9[%101, %c0_39, %c0_40] : memref<8x8x384xbf16, #tpu.memory_space<vmem>>, vector<1x8x384xbf16>
      %103 = vector.shape_cast %102 : vector<1x8x384xbf16> to vector<8x384xbf16>
      %104 = arith.extf %103 : vector<8x384xbf16> to vector<8x384xf32>
      %105 = arith.truncf %94 : vector<8x128xf32> to vector<8x128xbf16>
      %cst_41 = arith.constant dense<0.000000e+00> : vector<8x384xf32>
      %106 = tpu.matmul %105, %13, %cst_41 {dimension_numbers = #tpu.dot_dimension_numbers<[1], [0], [0], [1], [0, 0, 1, 1], [], []>} : vector<8x128xbf16>, vector<128x384xbf16>, vector<8x384xf32> -> vector<8x384xf32>
      %107 = vector.extract_strided_slice %104 {offsets = [0, 0], sizes = [8, 128], strides = [1, 1]} : vector<8x384xf32> to vector<8x128xf32>
      %108 = vector.extract_strided_slice %106 {offsets = [0, 0], sizes = [8, 128], strides = [1, 1]} : vector<8x384xf32> to vector<8x128xf32>
      %109 = arith.addf %107, %108 : vector<8x128xf32>
      %110 = arith.negf %109 : vector<8x128xf32>
      %111 = math.exp %110 : vector<8x128xf32>
      %cst_42 = arith.constant 1.000000e+00 : f32
      %112 = vector.broadcast %cst_42 : f32 to vector<8x128xf32>
      %113 = arith.addf %112, %111 : vector<8x128xf32>
      %114 = arith.divf %112, %113 : vector<8x128xf32>
      %115 = vector.extract_strided_slice %104 {offsets = [0, 128], sizes = [8, 128], strides = [1, 1]} : vector<8x384xf32> to vector<8x128xf32>
      %116 = vector.extract_strided_slice %106 {offsets = [0, 128], sizes = [8, 128], strides = [1, 1]} : vector<8x384xf32> to vector<8x128xf32>
      %117 = arith.addf %115, %116 : vector<8x128xf32>
      %118 = arith.negf %117 : vector<8x128xf32>
      %119 = math.exp %118 : vector<8x128xf32>
      %cst_43 = arith.constant 1.000000e+00 : f32
      %120 = vector.broadcast %cst_43 : f32 to vector<8x128xf32>
      %121 = arith.addf %120, %119 : vector<8x128xf32>
      %122 = arith.divf %120, %121 : vector<8x128xf32>
      %123 = vector.extract_strided_slice %104 {offsets = [0, 256], sizes = [8, 128], strides = [1, 1]} : vector<8x384xf32> to vector<8x128xf32>
      %124 = vector.extract_strided_slice %106 {offsets = [0, 256], sizes = [8, 128], strides = [1, 1]} : vector<8x384xf32> to vector<8x128xf32>
      %125 = arith.addf %124, %16 : vector<8x128xf32>
      %126 = arith.mulf %114, %125 : vector<8x128xf32>
      %127 = arith.addf %123, %126 : vector<8x128xf32>
      %128 = math.tanh %127 : vector<8x128xf32>
      %cst_44 = arith.constant 1.000000e+00 : f32
      %129 = vector.broadcast %cst_44 : f32 to vector<8x128xf32>
      %130 = arith.subf %129, %122 : vector<8x128xf32>
      %131 = arith.mulf %130, %128 : vector<8x128xf32>
      %132 = arith.mulf %122, %94 : vector<8x128xf32>
      %133 = arith.addf %131, %132 : vector<8x128xf32>
      %134 = arith.truncf %133 : vector<8x128xf32> to vector<8x128xbf16>
      %135 = arith.index_cast %100 : i32 to index
      %c0_45 = arith.constant 0 : index
      %c0_46 = arith.constant 0 : index
      %136 = vector.load %arg8[%135, %c0_45, %c0_46] : memref<8x8x128xbf16, #tpu.memory_space<vmem>>, vector<1x8x128xbf16>
      %137 = vector.shape_cast %136 : vector<1x8x128xbf16> to vector<8x128xbf16>
      %138 = vector.shape_cast %134 : vector<8x128xbf16> to vector<1x8x128xbf16>
      tpu.vector_store %arg8[%135, %c0_45, %c0_46], %138 {strides = array<i32>} : memref<8x8x128xbf16, #tpu.memory_space<vmem>>, vector<1x8x128xbf16>,
      %c3_i32 = arith.constant 3 : i32
      %139 = arith.addi %21, %c3_i32 : i32
      %140 = arith.index_cast %139 : i32 to index
      %c0_47 = arith.constant 0 : index
      %c0_48 = arith.constant 0 : index
      %141 = vector.load %arg9[%140, %c0_47, %c0_48] : memref<8x8x384xbf16, #tpu.memory_space<vmem>>, vector<1x8x384xbf16>
      %142 = vector.shape_cast %141 : vector<1x8x384xbf16> to vector<8x384xbf16>
      %143 = arith.extf %142 : vector<8x384xbf16> to vector<8x384xf32>
      %144 = arith.truncf %133 : vector<8x128xf32> to vector<8x128xbf16>
      %cst_49 = arith.constant dense<0.000000e+00> : vector<8x384xf32>
      %145 = tpu.matmul %144, %13, %cst_49 {dimension_numbers = #tpu.dot_dimension_numbers<[1], [0], [0], [1], [0, 0, 1, 1], [], []>} : vector<8x128xbf16>, vector<128x384xbf16>, vector<8x384xf32> -> vector<8x384xf32>
      %146 = vector.extract_strided_slice %143 {offsets = [0, 0], sizes = [8, 128], strides = [1, 1]} : vector<8x384xf32> to vector<8x128xf32>
      %147 = vector.extract_strided_slice %145 {offsets = [0, 0], sizes = [8, 128], strides = [1, 1]} : vector<8x384xf32> to vector<8x128xf32>
      %148 = arith.addf %146, %147 : vector<8x128xf32>
      %149 = arith.negf %148 : vector<8x128xf32>
      %150 = math.exp %149 : vector<8x128xf32>
      %cst_50 = arith.constant 1.000000e+00 : f32
      %151 = vector.broadcast %cst_50 : f32 to vector<8x128xf32>
      %152 = arith.addf %151, %150 : vector<8x128xf32>
      %153 = arith.divf %151, %152 : vector<8x128xf32>
      %154 = vector.extract_strided_slice %143 {offsets = [0, 128], sizes = [8, 128], strides = [1, 1]} : vector<8x384xf32> to vector<8x128xf32>
      %155 = vector.extract_strided_slice %145 {offsets = [0, 128], sizes = [8, 128], strides = [1, 1]} : vector<8x384xf32> to vector<8x128xf32>
      %156 = arith.addf %154, %155 : vector<8x128xf32>
      %157 = arith.negf %156 : vector<8x128xf32>
      %158 = math.exp %157 : vector<8x128xf32>
      %cst_51 = arith.constant 1.000000e+00 : f32
      %159 = vector.broadcast %cst_51 : f32 to vector<8x128xf32>
      %160 = arith.addf %159, %158 : vector<8x128xf32>
      %161 = arith.divf %159, %160 : vector<8x128xf32>
      %162 = vector.extract_strided_slice %143 {offsets = [0, 256], sizes = [8, 128], strides = [1, 1]} : vector<8x384xf32> to vector<8x128xf32>
      %163 = vector.extract_strided_slice %145 {offsets = [0, 256], sizes = [8, 128], strides = [1, 1]} : vector<8x384xf32> to vector<8x128xf32>
      %164 = arith.addf %163, %16 : vector<8x128xf32>
      %165 = arith.mulf %153, %164 : vector<8x128xf32>
      %166 = arith.addf %162, %165 : vector<8x128xf32>
      %167 = math.tanh %166 : vector<8x128xf32>
      %cst_52 = arith.constant 1.000000e+00 : f32
      %168 = vector.broadcast %cst_52 : f32 to vector<8x128xf32>
      %169 = arith.subf %168, %161 : vector<8x128xf32>
      %170 = arith.mulf %169, %167 : vector<8x128xf32>
      %171 = arith.mulf %161, %133 : vector<8x128xf32>
      %172 = arith.addf %170, %171 : vector<8x128xf32>
      %173 = arith.truncf %172 : vector<8x128xf32> to vector<8x128xbf16>
      %174 = arith.index_cast %139 : i32 to index
      %c0_53 = arith.constant 0 : index
      %c0_54 = arith.constant 0 : index
      %175 = vector.load %arg8[%174, %c0_53, %c0_54] : memref<8x8x128xbf16, #tpu.memory_space<vmem>>, vector<1x8x128xbf16>
      %176 = vector.shape_cast %175 : vector<1x8x128xbf16> to vector<8x128xbf16>
      %177 = vector.shape_cast %173 : vector<8x128xbf16> to vector<1x8x128xbf16>
      tpu.vector_store %arg8[%174, %c0_53, %c0_54], %177 {strides = array<i32>} : memref<8x8x128xbf16, #tpu.memory_space<vmem>>, vector<1x8x128xbf16>,
      scf.yield %172 : vector<8x128xf32>
    }
    %c2_i32_17 = arith.constant 2 : i32
    %c0_18 = arith.constant 0 : index
    %c0_19 = arith.constant 0 : index
    %20 = vector.load %arg10[%c0_18, %c0_19] : memref<8x128xf32, #tpu.memory_space<vmem>>, vector<8x128xf32>
    tpu.vector_store %arg10[%c0_18, %c0_19], %19 {strides = array<i32>} : memref<8x128xf32, #tpu.memory_space<vmem>>, vector<8x128xf32>,
    return
  }
  func.func @transform_0(%arg0: i32, %arg1: i32) -> (i32, i32, i32) {
    %c0_i32 = arith.constant 0 : i32
    %c0_i32_0 = arith.constant 0 : i32
    return %arg1, %arg0, %c0_i32 : i32, i32, i32
  }
  func.func @transform_1(%arg0: i32, %arg1: i32) -> (i32, i32) {
    %c0_i32 = arith.constant 0 : i32
    %c0_i32_0 = arith.constant 0 : i32
    return %arg0, %c0_i32 : i32, i32
  }
  func.func @transform_2(%arg0: i32, %arg1: i32) -> (i32, i32) {
    %c0_i32 = arith.constant 0 : i32
    %c0_i32_0 = arith.constant 0 : i32
    %c0_i32_1 = arith.constant 0 : i32
    return %c0_i32, %c0_i32_0 : i32, i32
  }
  func.func @transform_3(%arg0: i32, %arg1: i32) -> (i32, i32) {
    %c0_i32 = arith.constant 0 : i32
    %c0_i32_0 = arith.constant 0 : i32
    %c0_i32_1 = arith.constant 0 : i32
    return %c0_i32, %c0_i32_0 : i32, i32
  }
  func.func @transform_4(%arg0: i32, %arg1: i32) -> (i32, i32) {
    %c0_i32 = arith.constant 0 : i32
    %c0_i32_0 = arith.constant 0 : i32
    %c0_i32_1 = arith.constant 0 : i32
    return %c0_i32, %c0_i32_0 : i32, i32
  }
  func.func @transform_5(%arg0: i32, %arg1: i32) -> (i32, i32) {
    %c0_i32 = arith.constant 0 : i32
    %c0_i32_0 = arith.constant 0 : i32
    %c0_i32_1 = arith.constant 0 : i32
    return %c0_i32, %c0_i32_0 : i32, i32
  }
  func.func @transform_6(%arg0: i32, %arg1: i32) -> (i32, i32, i32) {
    %c0_i32 = arith.constant 0 : i32
    %c0_i32_0 = arith.constant 0 : i32
    return %arg1, %arg0, %c0_i32 : i32, i32, i32
  }
}

module attributes {stable_mosaic.version = 11 : i64} {
  func.func @dense_kernel(%arg0: i32, %arg1: i32, %arg2: memref<32x128xbf16, #tpu.memory_space<vmem>>, %arg3: memref<128x128xbf16, #tpu.memory_space<vmem>>, %arg4: memref<1x128xf32, #tpu.memory_space<vmem>>, %arg5: memref<32x128xf32, #tpu.memory_space<vmem>>) attributes {dimension_semantics = [#tpu.dimension_semantics<parallel>, #tpu.dimension_semantics<parallel>], iteration_bounds = array<i64: 1, 1>, scalar_prefetch = 0 : i64, scratch_operands = 0 : i64, tpu.core_type = #tpu.core_type<tc>, window_params = [{transform_indices = @transform_0, window_bounds = array<i64: 32, 128>}, {transform_indices = @transform_1, window_bounds = array<i64: 128, 128>}, {transform_indices = @transform_2, window_bounds = array<i64: 1, 128>}, {transform_indices = @transform_3, window_bounds = array<i64: 32, 128>}]} {
    %c0 = arith.constant 0 : index
    %c0_0 = arith.constant 0 : index
    %0 = vector.load %arg2[%c0, %c0_0] : memref<32x128xbf16, #tpu.memory_space<vmem>>, vector<32x128xbf16>
    %c0_1 = arith.constant 0 : index
    %c0_2 = arith.constant 0 : index
    %1 = vector.load %arg3[%c0_1, %c0_2] : memref<128x128xbf16, #tpu.memory_space<vmem>>, vector<128x128xbf16>
    %cst = arith.constant dense<0.000000e+00> : vector<32x128xf32>
    %2 = tpu.matmul %0, %1, %cst {dimension_numbers = #tpu.dot_dimension_numbers<[1], [0], [0], [1], [0, 0, 1, 1], [], []>} : vector<32x128xbf16>, vector<128x128xbf16>, vector<32x128xf32> -> vector<32x128xf32>
    %c0_3 = arith.constant 0 : index
    %c0_4 = arith.constant 0 : index
    %3 = vector.load %arg4[%c0_3, %c0_4] : memref<1x128xf32, #tpu.memory_space<vmem>>, vector<1x128xf32>
    %4 = vector.broadcast %3 : vector<1x128xf32> to vector<32x128xf32>
    %5 = arith.addf %2, %4 : vector<32x128xf32>
    %c0_5 = arith.constant 0 : index
    %c0_6 = arith.constant 0 : index
    %6 = vector.load %arg5[%c0_5, %c0_6] : memref<32x128xf32, #tpu.memory_space<vmem>>, vector<32x128xf32>
    tpu.vector_store %arg5[%c0_5, %c0_6], %5 {strides = array<i32>} : memref<32x128xf32, #tpu.memory_space<vmem>>, vector<32x128xf32>,
    return
  }
  func.func @transform_0(%arg0: i32, %arg1: i32) -> (i32, i32) {
    %c0_i32 = arith.constant 0 : i32
    %c0_i32_0 = arith.constant 0 : i32
    return %arg0, %c0_i32 : i32, i32
  }
  func.func @transform_1(%arg0: i32, %arg1: i32) -> (i32, i32) {
    %c0_i32 = arith.constant 0 : i32
    %c0_i32_0 = arith.constant 0 : i32
    return %c0_i32, %arg1 : i32, i32
  }
  func.func @transform_2(%arg0: i32, %arg1: i32) -> (i32, i32) {
    %c0_i32 = arith.constant 0 : i32
    %c0_i32_0 = arith.constant 0 : i32
    return %c0_i32, %arg1 : i32, i32
  }
  func.func @transform_3(%arg0: i32, %arg1: i32) -> (i32, i32) {
    %c0_i32 = arith.constant 0 : i32
    return %arg0, %arg1 : i32, i32
  }
}

</mosaic_0001>

<bundles_post_ra>
// kernel: rnn_decoder_forward.5
= control target key start
LH: loop header
LB: loop body
LE: loop exit
PB: predicated region body
PF: predicated region fallthrough
CT: control target
= control target key end

     0   :  { %s275_s1 = inlined_call_operand.vmem [shape: bf16[128,128], index: 1, kind: input, shape index: {}]   ;;  %s276_s0 = inlined_call_operand.vmem [shape: bf16[32,128], index: 0, kind: input, shape index: {}]   ;;  %s277_s2 = inlined_call_operand.vmem [shape: f32[1,128], index: 2, kind: input, shape index: {}]   ;;  %s278_s3 = inlined_call_operand.vmem [shape: f32[32,128], index: 3, kind: output, shape index: {}]  }
   0x1   :  { %v200_v0 = vld [vmem:[%s275_s1 + $0x38] sm:$0xff]   ;;  %v201_v1 = vld [vmem:[%s275_s1 + $0x30] sm:$0xff]   ;;  %v202_v2 = vld [vmem:[%s275_s1 + $0x28] sm:$0xff]  }
   0x2   :  { %180 = vmatprep.subr.bf16.mxu0 %v200_v0  ;;  %v203_v3 = vld [vmem:[%s275_s1 + $0x20] sm:$0xff]   ;;  %v204_v5 = vld [vmem:[%s275_s1 + $0x18] sm:$0xff]   ;;  %v205_v6 = vld [vmem:[%s275_s1 + $0x10] sm:$0xff]  }
   0x3   :  { %181 = vmatpush3.bf16.msra.mxu0 %v200_v0  ;;  %v208_v4 = vld [vmem:[%s276_s0] sm:$0xff]   ;;  %v206_v7 = vld [vmem:[%s275_s1 + $0x8] sm:$0xff]  }
   0x4   :  { %182 = vmatprep.subr.bf16.mxu0 %v201_v1  ;;  %196 = vmatprep.mubr.bf16.mxu0 %v208_v4  ;;  %v207_v8 = vld [vmem:[%s275_s1] sm:$0xff]   ;;  %v209_v9 = vld [vmem:[%s276_s0 + $0x8] sm:$0xff]  }
   0x5   :  { %v159_v10 = vld [vmem:[%s277_s2] ss:$0 sm:$0xff] }
   0x7   :  { %183 = vmatpush3.bf16.msra.mxu0 %v201_v1 }
   0x8   :  { %184 = vmatprep.subr.bf16.mxu0 %v202_v2 }
   0xb   :  { %185 = vmatpush3.bf16.msra.mxu0 %v202_v2 }
   0xc   :  { %186 = vmatprep.subr.bf16.mxu0 %v203_v3 }
   0xf   :  { %187 = vmatpush3.bf16.msra.mxu0 %v203_v3 }
  0x10   :  { %188 = vmatprep.subr.bf16.mxu0 %v204_v5 }
  0x13   :  { %189 = vmatpush3.bf16.msra.mxu0 %v204_v5 }
  0x14   :  { %190 = vmatprep.subr.bf16.mxu0 %v205_v6 }
  0x17   :  { %191 = vmatpush3.bf16.msra.mxu0 %v205_v6 }
  0x18   :  { %192 = vmatprep.subr.bf16.mxu0 %v206_v7 }
  0x1b   :  { %193 = vmatpush3.bf16.msra.mxu0 %v206_v7 }
  0x1c   :  { %194 = vmatprep.subr.bf16.mxu0 %v207_v8 }
  0x1f   :  { %195 = vmatpush3.bf16.msra.mxu0 %v207_v8 }
  0x22   :  { %197 = vmatmul.mubr.bf16.vlgmr.msra.gmra.mxu0 %v209_v9 }
  0xe2   :  { %v198_v11 = vpop.f32.mrf.mxu0 }
  0xe3   :  { %v145_v12 = vadd.f32 %v198_v11, %v159_v10 }
  0xe4   :  { %v136_v13 = vpop.f32.mrf.mxu0 }
  0xe5   :  { %153 = vst [vmem:[%s278_s3 + $0x10] sm:$0xff] %v145_v12  ;;  %v137_v14 = vadd.f32 %v159_v10, %v136_v13 }
  0xe6   :  { %v199_v15 = vpop.f32.mrf.mxu0 }
  0xe7   :  { %151 = vst [vmem:[%s278_s3] sm:$0xff] %v137_v14  ;;  %v148_v16 = vadd.f32 %v199_v15, %v159_v10 }
  0xe8   :  { %v139_v17 = vpop.f32.mrf.mxu0 }
  0xe9   :  { %154 = vst [vmem:[%s278_s3 + $0x18] sm:$0xff] %v148_v16  ;;  %v140_v18 = vadd.f32 %v159_v10, %v139_v17 }
  0xeb   :  { %152 = vst [vmem:[%s278_s3 + $0x8] sm:$0xff] %v140_v18 }

// kernel: rnn_decoder_forward.3
= control target key start
LH: loop header
LB: loop body
LE: loop exit
PB: predicated region body
PF: predicated region fallthrough
CT: control target
= control target key end

     0   :  { %v1565_v1 = vmov 0   ;;  %v72_v63 = vlaneseq  ;;  %s2177_s1 = inlined_call_operand.vmem [shape: f32[8,128], index: 1, kind: input, shape index: {}]   ;;  %s2178_s2 = inlined_call_operand.vmem [shape: bf16[128,384], index: 2, kind: input, shape index: {}]   ;;  %s2179_s6 = inlined_call_operand.vmem [shape: bf16[8,8,128], index: 6, kind: output, shape index: {}]   ;;  %s2180_s0 = inlined_call_operand.vmem [shape: bf16[8,8,128], index: 0, kind: input, shape index: {}]   ;;  %s2181_s3 = inlined_call_operand.vmem [shape: bf16[128,384], index: 3, kind: input, shape index: {}]   ;;  %s2182_s5 = inlined_call_operand.vmem [shape: f32[1,128], index: 5, kind: input, shape index: {}]   ;;  %s2183_s4 = inlined_call_operand.vmem [shape: f32[1,384], index: 4, kind: input, shape index: {}]  }
   0x1   :  { %v1607_v0 = vld [vmem:[%s2177_s1] sm:$0xff]   ;;  %271 = vmatprep.mubr.bf16.mxu0 %v1565_v1  ;;  %v1473_v2 = vld [vmem:[%s2178_s2 + $0xac] ss:$12 sps:$4 sm:$0xff]   ;;  %v1475_v3 = vld [vmem:[%s2178_s2 + $0xa8] ss:$12 sps:$4 sm:$0xff]  }
   0x2   :  { %v1476_v4 = vld [vmem:[%s2178_s2 + $0x94] ss:$12 sps:$4 sm:$0xff]   ;;  %239 = vmatprep.subr.bf16.mxu0 %v1473_v2  ;;  %v1478_v5 = vld [vmem:[%s2178_s2 + $0x90] ss:$12 sps:$4 sm:$0xff]   ;;  %v1486_v8 = vld [vmem:[%s2178_s2 + $0x98] ss:$12 sps:$4 sm:$0xff]  }
   0x3   :  { %240 = vmatpush1.bf16.msra.mxu0 %v1475_v3  ;;  %v1479_v6 = vld [vmem:[%s2178_s2 + $0x7c] ss:$12 sps:$4 sm:$0xff]   ;;  %v1481_v9 = vld [vmem:[%s2178_s2 + $0x78] ss:$12 sps:$4 sm:$0xff]   ;;  %v1490_v11 = vld [vmem:[%s2178_s2 + $0x80] ss:$12 sps:$4 sm:$0xff]  }
   0x4   :  { %241 = vmatprep.subr.bf16.mxu0 %v1476_v4  ;;  %v1482_v7 = vld [vmem:[%s2178_s2 + $0xb0] ss:$12 sps:$4 sm:$0xff]   ;;  %v1485_v12 = vld [vmem:[%s2178_s2 + $0x60] ss:$12 sps:$4 sm:$0xff]   ;;  %v1494_v14 = vld [vmem:[%s2178_s2 + $0x68] ss:$12 sps:$4 sm:$0xff]  }
   0x5   :  { %1349 = vmatprep.subr.bf16.mxu1 %v1482_v7  ;;  %v1483_v10 = vld [vmem:[%s2178_s2 + $0x64] ss:$12 sps:$4 sm:$0xff]   ;;  %v1487_v13 = vld [vmem:[%s2178_s2 + $0x4c] ss:$12 sps:$4 sm:$0xff]   ;;  %v1489_v15 = vld [vmem:[%s2178_s2 + $0x48] ss:$12 sps:$4 sm:$0xff]  }
   0x6   :  { %1350 = vmatpush3.bf16.msra.mxu1 %v1482_v7  ;;  %v1491_v16 = vld [vmem:[%s2178_s2 + $0x34] ss:$12 sps:$4 sm:$0xff]   ;;  %v1498_v17 = vld [vmem:[%s2178_s2 + $0x50] ss:$12 sps:$4 sm:$0xff]   ;;  %v1502_v21 = vld [vmem:[%s2178_s2 + $0x38] ss:$12 sps:$4 sm:$0xff]  }
   0x7   :  { %242 = vmatpush1.bf16.msra.mxu0 %v1478_v5  ;;  %1351 = vmatprep.subr.bf16.mxu1 %v1486_v8  ;;  %v1503_v18 = vld [vmem:[%s2180_s0] sm:$0xff]   ;;  %v1493_v19 = vld [vmem:[%s2178_s2 + $0x30] ss:$12 sps:$4 sm:$0xff]   ;;  %v1505_v26 = vld [vmem:[%s2178_s2 + $0x8] ss:$12 sps:$4 sm:$0xff]  }
   0x8   :  { %243 = vmatprep.subr.bf16.mxu0 %v1479_v6  ;;  %1365 = vmatprep.mubr.bf16.mxu1 %v1503_v18  ;;  %v1495_v20 = vld [vmem:[%s2178_s2 + $0x1c] ss:$12 sps:$4 sm:$0xff]   ;;  %v1497_v22 = vld [vmem:[%s2178_s2 + $0x18] ss:$12 sps:$4 sm:$0xff]   ;;  %v1504_v24 = vld [vmem:[%s2178_s2 + $0x20] ss:$12 sps:$4 sm:$0xff]  }
   0x9   :  { %v1499_v23 = vld [vmem:[%s2178_s2 + $0x4] ss:$12 sps:$4 sm:$0xff]   ;;  %v1501_v25 = vld [vmem:[%s2178_s2] ss:$12 sps:$4 sm:$0xff]   ;;  %v1508_v29 = vld [vmem:[%s2180_s0 + $0x18] sm:$0xff]  }
   0xa   :  { %1352 = vmatpush3.bf16.msra.mxu1 %v1486_v8  ;;  %v1507_v27 = vld [vmem:[%s2180_s0 + $0x10] sm:$0xff]   ;;  %v1506_v28 = vld [vmem:[%s2180_s0 + $0x8] sm:$0xff]   ;;  %v1700_v30 = vld [vmem:[%s2181_s3] sm:$0xff] }
   0xb   :  { %244 = vmatpush1.bf16.msra.mxu0 %v1481_v9  ;;  %1353 = vmatprep.subr.bf16.mxu1 %v1490_v11  ;;  %2196 = vst [vmem:[#allocation4_spill] sm:$0xff] %v1700_v30  ;;  %v1705_v31 = vld [vmem:[%s2181_s3 + $0x8] sm:$0xf]  ;;  %v1710_v32 = vld [vmem:[%s2181_s3 + $0xc] sm:$0xff]  ;;  %v1715_v33 = vld [vmem:[%s2181_s3 + $0x14] sm:$0xf] }
   0xc   :  { %245 = vmatprep.subr.bf16.mxu0 %v1483_v10  ;;  %2197 = vst [vmem:[#allocation5_spill] sm:$0xff] %v1705_v31  ;;  %2198 = vst [vmem:[#allocation6_spill] sm:$0xff] %v1710_v32  ;;  %v1720_v34 = vld [vmem:[%s2181_s3 + $0x18] sm:$0xff]  ;;  %v1725_v35 = vld [vmem:[%s2181_s3 + $0x20] sm:$0xf] }
   0xd   :  { %2199 = vst [vmem:[#allocation7_spill] sm:$0xff] %v1715_v33  ;;  %2200 = vst [vmem:[#allocation8_spill] sm:$0xff] %v1720_v34  ;;  %v1730_v36 = vld [vmem:[%s2181_s3 + $0x24] sm:$0xff]  ;;  %v1735_v37 = vld [vmem:[%s2181_s3 + $0x2c] sm:$0xf] }
   0xe   :  { %1354 = vmatpush3.bf16.msra.mxu1 %v1490_v11  ;;  %2201 = vst [vmem:[#allocation9_spill] sm:$0xff] %v1725_v35  ;;  %2202 = vst [vmem:[#allocation10_spill] sm:$0xff] %v1730_v36  ;;  %v1740_v38 = vld [vmem:[%s2181_s3 + $0x30] sm:$0xff]  ;;  %v1745_v39 = vld [vmem:[%s2181_s3 + $0x38] sm:$0xf] }
   0xf   :  { %246 = vmatpush1.bf16.msra.mxu0 %v1485_v12  ;;  %1355 = vmatprep.subr.bf16.mxu1 %v1494_v14  ;;  %2203 = vst [vmem:[#allocation11_spill] sm:$0xff] %v1735_v37  ;;  %2204 = vst [vmem:[#allocation12_spill] sm:$0xff] %v1740_v38  ;;  %v1750_v40 = vld [vmem:[%s2181_s3 + $0x3c] sm:$0xff]  ;;  %v1755_v41 = vld [vmem:[%s2181_s3 + $0x44] sm:$0xf] }
  0x10   :  { %247 = vmatprep.subr.bf16.mxu0 %v1487_v13  ;;  %2205 = vst [vmem:[#allocation13_spill] sm:$0xff] %v1745_v39  ;;  %2206 = vst [vmem:[#allocation14_spill] sm:$0xff] %v1750_v40  ;;  %v1760_v42 = vld [vmem:[%s2181_s3 + $0x48] sm:$0xff]  ;;  %v1765_v43 = vld [vmem:[%s2181_s3 + $0x50] sm:$0xf] }
  0x11   :  { %2207 = vst [vmem:[#allocation15_spill] sm:$0xff] %v1755_v41  ;;  %2208 = vst [vmem:[#allocation16_spill] sm:$0xff] %v1760_v42  ;;  %v1770_v44 = vld [vmem:[%s2181_s3 + $0x54] sm:$0xff]  ;;  %v1775_v45 = vld [vmem:[%s2181_s3 + $0x5c] sm:$0xf] }
  0x12   :  { %1356 = vmatpush3.bf16.msra.mxu1 %v1494_v14  ;;  %2209 = vst [vmem:[#allocation17_spill] sm:$0xff] %v1765_v43  ;;  %2210 = vst [vmem:[#allocation18_spill] sm:$0xff] %v1770_v44  ;;  %v1780_v46 = vld [vmem:[%s2181_s3 + $0x60] sm:$0xff]  ;;  %v1785_v47 = vld [vmem:[%s2181_s3 + $0x68] sm:$0xf] }
  0x13   :  { %248 = vmatpush1.bf16.msra.mxu0 %v1489_v15  ;;  %1357 = vmatprep.subr.bf16.mxu1 %v1498_v17  ;;  %v1790_v48 = vld [vmem:[%s2181_s3 + $0x6c] sm:$0xff]  ;;  %v1795_v49 = vld [vmem:[%s2181_s3 + $0x74] sm:$0xf]  ;;  %v1800_v50 = vld [vmem:[%s2181_s3 + $0x78] sm:$0xff] }
  0x14   :  { %249 = vmatprep.subr.bf16.mxu0 %v1491_v16  ;;  %v1805_v51 = vld [vmem:[%s2181_s3 + $0x80] sm:$0xf]  ;;  %v1810_v52 = vld [vmem:[%s2181_s3 + $0x84] sm:$0xff]  ;;  %v1815_v53 = vld [vmem:[%s2181_s3 + $0x8c] sm:$0xf] }
  0x15   :  { %v1820_v54 = vld [vmem:[%s2181_s3 + $0x90] sm:$0xff]  ;;  %v1825_v55 = vld [vmem:[%s2181_s3 + $0x98] sm:$0xf]  ;;  %v1830_v56 = vld [vmem:[%s2181_s3 + $0x9c] sm:$0xff] }
  0x16   :  { %1358 = vmatpush3.bf16.msra.mxu1 %v1498_v17  ;;  %v1835_v57 = vld [vmem:[%s2181_s3 + $0xa4] sm:$0xf]  ;;  %v1840_v58 = vld [vmem:[%s2181_s3 + $0xa8] sm:$0xff]  ;;  %v1845_v59 = vld [vmem:[%s2181_s3 + $0xb0] sm:$0xf] }
  0x17   :  { %250 = vmatpush1.bf16.msra.mxu0 %v1493_v19  ;;  %1359 = vmatprep.subr.bf16.mxu1 %v1502_v21  ;;  %v1850_v60 = vld [vmem:[%s2181_s3 + $0xb4] sm:$0xff]  ;;  %v1855_v61 = vld [vmem:[%s2181_s3 + $0xbc] sm:$0xf]  ;;  %v1860_v62 = vld [vmem:[%s2182_s5] ss:$0 sm:$0xff]  ;;  %s1888_s3 = smov 0  }
  0x18   :  { %251 = vmatprep.subr.bf16.mxu0 %v1495_v20  ;;  %v70_v4 = vld [vmem:[%s2183_s4] sm:$0x7] }
  0x1a   :  { %1360 = vmatpush3.bf16.msra.mxu1 %v1502_v21 }
  0x1b   :  { %252 = vmatpush1.bf16.msra.mxu0 %v1497_v22  ;;  %1361 = vmatprep.subr.bf16.mxu1 %v1504_v24 }
  0x1c   :  { %253 = vmatprep.subr.bf16.mxu0 %v1499_v23 }
  0x1e   :  { %1362 = vmatpush3.bf16.msra.mxu1 %v1504_v24 }
  0x1f   :  { %254 = vmatpush1.bf16.msra.mxu0 %v1501_v25  ;;  %1363 = vmatprep.subr.bf16.mxu1 %v1505_v26 }
  0x22   :  { %272 = vmatmul.mubr.bf16.vlgmr.msra.gmra.mxu0 %v1503_v18  ;;  %1364 = vmatpush3.bf16.msra.mxu1 %v1505_v26 }
  0x23   :  { %281 = vmatprep.mubr.bf16.mxu0 %v1565_v1 }
  0x25   :  { %1366 = vmatmul.mubr.bf16.vlgmr.msra.gmra.mxu1 %v1506_v28 }
  0x26   :  { %1369 = vmatprep.mubr.bf16.mxu1 %v1507_v27 }
  0x2a   :  { %282 = vmatmul.mubr.bf16.gmra.mxu0 %v1506_v28 }
  0x2b   :  { %291 = vmatprep.mubr.bf16.mxu0 %v1565_v1 }
  0x2d   :  { %1370 = vmatmul.mubr.bf16.gmra.mxu1 %v1508_v29 }
  0x32   :  { %292 = vmatmul.mubr.bf16.gmra.mxu0 %v1507_v27 }
  0x33   :  { %301 = vmatprep.mubr.bf16.mxu0 %v1565_v1  ;;  %v73_v1 = vshrl.u32 %v72_v63, 7 }
  0x35   :  { %v74_v2 = vsub.s32 0, %v73_v1  ;;  %v78_v3 = vsub.s32 1, %v73_v1  ;;  %v82_v5 = vsub.s32 2, %v73_v1 }
  0x37   :  { %v1865_v6 = vrot.slane %v70_v4, %v74_v2  ;;  %v1867_v7 = vrot.slane %v70_v4, %v78_v3  ;;  %v83_v9 = vrot.slane %v70_v4, %v82_v5 }
  0x3a   :  { %302 = vmatmul.mubr.bf16.gmra.mxu0 %v1508_v29 }
  0xe2   :  { %v273_v8 = vpop.f32.mrf.mxu0 }
  0xe3   :  { %v274_v11 = vadd.f32 %v273_v8, %v1865_v6 }
  0xe4   :  { %v275_v10 = vpop.f32.mrf.mxu0 }
  0xe5   :  { %v276_v12 = vadd.f32 %v275_v10, %v1867_v7  ;;  %v1367_v14 = vpop.f32.mrf.mxu1 }
  0xe6   :  { %v277_v13 = vpop.f32.mrf.mxu0  ;;  %v355_v16 = vadd.f32 %v1367_v14, %v83_v9 }
  0xe7   :  { %v1280_v15 = vpack.c.bf16 %v276_v12, %v274_v11  ;;  %v346_v18 = vpop.f32.mrf.mxu1  ;;  %v278_v19 = vadd.f32 %v277_v13, %v1865_v6 }
  0xe8   :  { %v279_v17 = vpop.f32.mrf.mxu0  ;;  %v1285_v21 = vpack.c.bf16 %v355_v16, %v355_v16  ;;  %v347_v22 = vadd.f32 %v346_v18, %v83_v9 }
  0xe9   :  { %481 = vst [vmem:[#allocation2] sm:$0xff] %v1280_v15  ;;  %v280_v20 = vadd.f32 %v279_v17, %v1867_v7  ;;  %v1368_v24 = vpop.f32.mrf.mxu1 }
  0xea   :  { %v283_v23 = vpop.f32.mrf.mxu0  ;;  %486 = vst [vmem:[#allocation2 + $0x20] sm:$0xf] %v1285_v21  ;;  %v1281_v26 = vpack.c.bf16 %v347_v22, %v347_v22  ;;  %v358_v27 = vadd.f32 %v1368_v24, %v83_v9 }
  0xeb   :  { %v1282_v25 = vpack.c.bf16 %v280_v20, %v278_v19  ;;  %v349_v29 = vpop.f32.mrf.mxu1  ;;  %v284_v63 = vadd.f32 %v283_v23, %v1865_v6 }
  0xec   :  { %v285_v28 = vpop.f32.mrf.mxu0  ;;  %482 = vst [vmem:[#allocation2 + $0x8] sm:$0xf] %v1281_v26  ;;  %v1287_v2 = vpack.c.bf16 %v358_v27, %v358_v27  ;;  %v350_v3 = vadd.f32 %v349_v29, %v83_v9 }
  0xed   :  { %483 = vst [vmem:[#allocation2 + $0xc] sm:$0xff] %v1282_v25  ;;  %v286_v1 = vadd.f32 %v285_v28, %v1867_v7  ;;  %v1371_v5 = vpop.f32.mrf.mxu1 }
  0xee   :  { %v287_v4 = vpop.f32.mrf.mxu0  ;;  %488 = vst [vmem:[#allocation2 + $0x2c] sm:$0xf] %v1287_v2  ;;  %v1283_v10 = vpack.c.bf16 %v350_v3, %v350_v3  ;;  %v371_v11 = vadd.f32 %v1371_v5, %v83_v9 }
  0xef   :  { %v1284_v8 = vpack.c.bf16 %v286_v1, %v284_v63  ;;  %v362_v13 = vpop.f32.mrf.mxu1  ;;  %v288_v14 = vadd.f32 %v287_v4, %v1865_v6 }
  0xf0   :  { %v289_v12 = vpop.f32.mrf.mxu0  ;;  %484 = vst [vmem:[#allocation2 + $0x14] sm:$0xf] %v1283_v10  ;;  %v1293_v16 = vpack.c.bf16 %v371_v11, %v371_v11  ;;  %v363_v17 = vadd.f32 %v362_v13, %v83_v9 }
  0xf1   :  { %485 = vst [vmem:[#allocation2 + $0x18] sm:$0xff] %v1284_v8  ;;  %v290_v15 = vadd.f32 %v289_v12, %v1867_v7  ;;  %v1372_v19 = vpop.f32.mrf.mxu1 }
  0xf2   :  { %v293_v18 = vpop.f32.mrf.mxu0  ;;  %494 = vst [vmem:[#allocation2 + $0x50] sm:$0xf] %v1293_v16  ;;  %v1289_v21 = vpack.c.bf16 %v363_v17, %v363_v17  ;;  %v374_v22 = vadd.f32 %v1372_v19, %v83_v9 }
  0xf3   :  { %v1286_v20 = vpack.c.bf16 %v290_v15, %v288_v14  ;;  %v365_v24 = vpop.f32.mrf.mxu1  ;;  %v294_v25 = vadd.f32 %v293_v18, %v1865_v6 }
  0xf4   :  { %v295_v23 = vpop.f32.mrf.mxu0  ;;  %490 = vst [vmem:[#allocation2 + $0x38] sm:$0xf] %v1289_v21  ;;  %v1295_v27 = vpack.c.bf16 %v374_v22, %v374_v22  ;;  %v366_v28 = vadd.f32 %v365_v24, %v83_v9 }
  0xf5   :  { %487 = vst [vmem:[#allocation2 + $0x24] sm:$0xff] %v1286_v20  ;;  %v296_v26 = vadd.f32 %v295_v23, %v1867_v7 }
  0xf6   :  { %v297_v29 = vpop.f32.mrf.mxu0  ;;  %496 = vst [vmem:[#allocation2 + $0x5c] sm:$0xf] %v1295_v27  ;;  %v1291_v1 = vpack.c.bf16 %v366_v28, %v366_v28 }
  0xf7   :  { %v1288_v63 = vpack.c.bf16 %v296_v26, %v294_v25  ;;  %v298_v3 = vadd.f32 %v297_v29, %v1865_v6 }
  0xf8   :  { %v299_v2 = vpop.f32.mrf.mxu0  ;;  %492 = vst [vmem:[#allocation2 + $0x44] sm:$0xf] %v1291_v1 }
  0xf9   :  { %489 = vst [vmem:[#allocation2 + $0x30] sm:$0xff] %v1288_v63  ;;  %v300_v4 = vadd.f32 %v299_v2, %v1867_v7 }
  0xfa   :  { %v303_v5 = vpop.f32.mrf.mxu0 }
  0xfb   :  { %v1290_v8 = vpack.c.bf16 %v300_v4, %v298_v3  ;;  %v304_v11 = vadd.f32 %v303_v5, %v1865_v6 }
  0xfc   :  { %v305_v10 = vpop.f32.mrf.mxu0 }
  0xfd   :  { %491 = vst [vmem:[#allocation2 + $0x3c] sm:$0xff] %v1290_v8  ;;  %v306_v12 = vadd.f32 %v305_v10, %v1867_v7 }
  0xfe   :  { %v307_v9 = vpop.f32.mrf.mxu0 }
  0xff   :  { %v1292_v13 = vpack.c.bf16 %v306_v12, %v304_v11  ;;  %v308_v15 = vadd.f32 %v307_v9, %v1865_v6 }
 0x100   :  { %v309_v14 = vpop.f32.mrf.mxu0 }
 0x101   :  { %493 = vst [vmem:[#allocation2 + $0x48] sm:$0xff] %v1292_v13  ;;  %v310_v16 = vadd.f32 %v309_v14, %v1867_v7 }
 0x103   :  { %v1294_v17 = vpack.c.bf16 %v310_v16, %v308_v15 }
 0x105   :  { %495 = vst [vmem:[#allocation2 + $0x54] sm:$0xff] %v1294_v17 }
 0x106 LB: > { %v2211_v44 = vld [vmem:[#allocation18_spill] sm:$0xff]  ;;  %v2212_v42 = vld [vmem:[#allocation16_spill] sm:$0xff]  ;;  %v1898_v6 = vcombine.high %v1840_v58, %v1850_v60  ;;  %v1902_v7 = vcombine.low %v1840_v58, %v1850_v60  ;;  %v1906_v18 = vcombine.high %v1820_v54, %v1830_v56  ;;  %v1912_v19 = vcombine.low %v1820_v54, %v1830_v56  ;;  %v2219_v43 = vld [vmem:[#allocation17_spill] sm:$0xff]  ;;  %s1296_s4 = smul.u32 48, %s1563_s3  ;;  %s1297_s16 = sshll.u32 %s1563_s3, 4  ;;  %s1563_s3 = sphi %s1888_s3, %s542_s3   ;;  %v1559_v0 = vphi %v1607_v0, %v1132_v0  }
 0x107   : > { %v2213_v40 = vld [vmem:[#allocation14_spill] sm:$0xff]  ;;  %v2214_v38 = vld [vmem:[#allocation12_spill] sm:$0xff]  ;;  %v1916_v20 = vcombine.low %v1845_v59, %v1855_v61  ;;  %v1921_v21 = vcombine.high %v1800_v50, %v1810_v52  ;;  %v2190_v22 = vmov 0.0   ;;  %v2184_v23 = vmov 0   ;;  %v2220_v41 = vld [vmem:[#allocation15_spill] sm:$0xff]  ;;  %s2082_s19 = scalar_lea.vmem %s2179_s6, %s1297_s16  ;;  %s542_s3 = sadd.s32 1, %s1563_s3  }
 0x108   : > { %v2215_v36 = vld [vmem:[#allocation10_spill] sm:$0xff]  ;;  %v2216_v34 = vld [vmem:[#allocation8_spill] sm:$0xff]  ;;  %682 = vmatprep.subr.bf16.mxu0 %v1898_v6  ;;  %1373 = vmatprep.subr.bf16.mxu1 %v2190_v22  ;;  %v1928_v24 = vcombine.low %v1825_v55, %v1835_v57  ;;  %v1934_v25 = vcombine.low %v1800_v50, %v1810_v52  ;;  %v1939_v26 = vcombine.high %v1780_v46, %v1790_v48  ;;  %vm1568_vm0 = vmmov 0   ;;  %v2221_v39 = vld [vmem:[#allocation13_spill] sm:$0xff]  ;;  %s2067_s5 = scalar_lea.vmem [#allocation2], %s1296_s4  ;;  %p539_p0 = scmp.ge.s32.totalorder %s542_s3, 2  }
 0x109   : > { %v2217_v32 = vld [vmem:[#allocation6_spill] sm:$0xff]  ;;  %v2218_v30 = vld [vmem:[#allocation4_spill] sm:$0xff]  ;;  %683 = vmatpush1.bf16.msra.mxu0 %v1902_v7  ;;  %1374 = vmatpush3.bf16.msra.mxu1 %v1916_v20  ;;  %v1946_v27 = vcombine.low %v1805_v51, %v1815_v53  ;;  %v1952_v28 = vcombine.low %v1780_v46, %v1790_v48  ;;  %v1957_v29 = vcombine.high %v2212_v42, %v2211_v44  ;;  %v2222_v37 = vld [vmem:[#allocation11_spill] sm:$0xff] }
 0x10a   : > { %684 = vmatprep.subr.bf16.mxu0 %v1906_v18  ;;  %714 = vmatprep.mubr.bf16.mxu0 %v2184_v23  ;;  %v1962_v63 = vcombine.low %v1785_v47, %v1795_v49  ;;  %v1968_v1 = vcombine.low %v2212_v42, %v2211_v44  ;;  %v1973_v2 = vcombine.high %v2214_v38, %v2213_v40  ;;  %v2223_v35 = vld [vmem:[#allocation9_spill] sm:$0xff]  ;;  %v2224_v33 = vld [vmem:[#allocation7_spill] sm:$0xff] }
 0x10b   : > { %1375 = vmatprep.subr.bf16.mxu1 %v2190_v22  ;;  %1389 = vmatprep.mubr.msk.bf16.mxu1 %vm1568_vm0, %v2190_v22  ;;  %v1978_v3 = vcombine.low %v2219_v43, %v1775_v45  ;;  %v1984_v4 = vcombine.low %v2214_v38, %v2213_v40  ;;  %v1989_v5 = vcombine.high %v2216_v34, %v2215_v36  ;;  %v2225_v31 = vld [vmem:[#allocation5_spill] sm:$0xff] }
 0x10c   : > { %v1994_v8 = vcombine.low %v2221_v39, %v2220_v41  ;;  %v2000_v10 = vcombine.low %v2216_v34, %v2215_v36  ;;  %v2005_v11 = vcombine.high %v2218_v30, %v2217_v32  ;;  %v2010_v12 = vcombine.low %v2223_v35, %v2222_v37  ;;  %v548_v15 = vld [vmem:[%s2067_s5] sm:$0xff] }
 0x10d   : > { %685 = vmatpush1.bf16.msra.mxu0 %v1912_v19  ;;  %1376 = vmatpush3.bf16.msra.mxu1 %v1928_v24  ;;  %v2016_v9 = vcombine.low %v2218_v30, %v2217_v32  ;;  %v2022_v13 = vcombine.low %v2225_v31, %v2224_v33  ;;  %v553_v14 = vpack.c.bf16 %v1559_v0, %v1559_v0  ;;  %v550_v16 = vunpack.c.l.bf16 %v548_v15 }
 0x10e   : > { %686 = vmatprep.subr.bf16.mxu0 %v1921_v21  ;;  %1377 = vmatprep.subr.bf16.mxu1 %v2190_v22  ;;  %v551_v32 = vunpack.c.h.bf16 %v548_v15 }
 0x111   : > { %687 = vmatpush1.bf16.msra.mxu0 %v1934_v25  ;;  %1378 = vmatpush3.bf16.msra.mxu1 %v1946_v27 }
 0x112   : > { %688 = vmatprep.subr.bf16.mxu0 %v1939_v26  ;;  %1379 = vmatprep.subr.bf16.mxu1 %v2190_v22 }
 0x115   : > { %689 = vmatpush1.bf16.msra.mxu0 %v1952_v28  ;;  %1380 = vmatpush3.bf16.msra.mxu1 %v1962_v63 }
 0x116   : > { %690 = vmatprep.subr.bf16.mxu0 %v1957_v29  ;;  %1381 = vmatprep.subr.bf16.mxu1 %v2190_v22 }
 0x119   : > { %691 = vmatpush1.bf16.msra.mxu0 %v1968_v1  ;;  %1382 = vmatpush3.bf16.msra.mxu1 %v1978_v3 }
 0x11a   : > { %692 = vmatprep.subr.bf16.mxu0 %v1973_v2  ;;  %1383 = vmatprep.subr.bf16.mxu1 %v2190_v22 }
 0x11d   : > { %693 = vmatpush1.bf16.msra.mxu0 %v1984_v4  ;;  %1384 = vmatpush3.bf16.msra.mxu1 %v1994_v8 }
 0x11e   : > { %694 = vmatprep.subr.bf16.mxu0 %v1989_v5  ;;  %1385 = vmatprep.subr.bf16.mxu1 %v2190_v22 }
 0x121   : > { %695 = vmatpush1.bf16.msra.mxu0 %v2000_v10  ;;  %1386 = vmatpush3.bf16.msra.mxu1 %v2010_v12 }
 0x122   : > { %696 = vmatprep.subr.bf16.mxu0 %v2005_v11  ;;  %1387 = vmatprep.subr.bf16.mxu1 %v2190_v22 }
 0x125   : > { %697 = vmatpush1.bf16.msra.mxu0 %v2016_v9  ;;  %1388 = vmatpush3.bf16.msra.mxu1 %v2022_v13 }
 0x126   : > { %798 = vmatprep.subr.bf16.mxu0 %v1898_v6  ;;  %1393 = vmatprep.subr.bf16.mxu1 %v2190_v22 }
 0x128   : > { %715 = vmatmul.mubr.bf16.vlgmr.msra.gmra.mxu0 %v553_v14  ;;  %1390 = vmatmul.mubr.bf16.vlgmr.msra.gmra.mxu1 %v553_v14 }
 0x129   : > { %799 = vmatpush1.bf16.msra.mxu0 %v1902_v7  ;;  %830 = vmatprep.mubr.bf16.mxu0 %v2184_v23 }
 0x12a   : > { %800 = vmatprep.subr.bf16.mxu0 %v1906_v18  ;;  %1394 = vmatpush3.bf16.msra.mxu1 %v1916_v20 }
 0x12b   : > { %1409 = vmatprep.mubr.msk.bf16.mxu1 %vm1568_vm0, %v2190_v22  ;;  %1395 = vmatprep.subr.bf16.mxu1 %v2190_v22 }
 0x12d   : > { %801 = vmatpush1.bf16.msra.mxu0 %v1912_v19 }
 0x12e   : > { %802 = vmatprep.subr.bf16.mxu0 %v1921_v21  ;;  %1396 = vmatpush3.bf16.msra.mxu1 %v1928_v24 }
 0x12f   : > { %1397 = vmatprep.subr.bf16.mxu1 %v2190_v22 }
 0x131   : > { %803 = vmatpush1.bf16.msra.mxu0 %v1934_v25 }
 0x132   : > { %804 = vmatprep.subr.bf16.mxu0 %v1939_v26  ;;  %1398 = vmatpush3.bf16.msra.mxu1 %v1946_v27 }
 0x133   : > { %1399 = vmatprep.subr.bf16.mxu1 %v2190_v22 }
 0x135   : > { %805 = vmatpush1.bf16.msra.mxu0 %v1952_v28 }
 0x136   : > { %806 = vmatprep.subr.bf16.mxu0 %v1957_v29  ;;  %1400 = vmatpush3.bf16.msra.mxu1 %v1962_v63 }
 0x137   : > { %1401 = vmatprep.subr.bf16.mxu1 %v2190_v22 }
 0x139   : > { %807 = vmatpush1.bf16.msra.mxu0 %v1968_v1 }
 0x13a   : > { %808 = vmatprep.subr.bf16.mxu0 %v1973_v2  ;;  %1402 = vmatpush3.bf16.msra.mxu1 %v1978_v3 }
 0x13b   : > { %1403 = vmatprep.subr.bf16.mxu1 %v2190_v22 }
 0x13d   : > { %809 = vmatpush1.bf16.msra.mxu0 %v1984_v4 }
 0x13e   : > { %810 = vmatprep.subr.bf16.mxu0 %v1989_v5  ;;  %1404 = vmatpush3.bf16.msra.mxu1 %v1994_v8 }
 0x13f   : > { %1405 = vmatprep.subr.bf16.mxu1 %v2190_v22 }
 0x141   : > { %811 = vmatpush1.bf16.msra.mxu0 %v2000_v10 }
 0x142   : > { %812 = vmatprep.subr.bf16.mxu0 %v2005_v11  ;;  %1406 = vmatpush3.bf16.msra.mxu1 %v2010_v12 }
 0x143   : > { %1407 = vmatprep.subr.bf16.mxu1 %v2190_v22 }
 0x145   : > { %813 = vmatpush1.bf16.msra.mxu0 %v2016_v9 }
 0x146   : > { %914 = vmatprep.subr.bf16.mxu0 %v1898_v6  ;;  %1408 = vmatpush3.bf16.msra.mxu1 %v2022_v13 }
 0x147   : > { %1413 = vmatprep.subr.bf16.mxu1 %v2190_v22 }
 0x1e8   : > { %v716_v17 = vpop.f32.mrf.mxu0  ;;  %v757_v30 = vpop.f32.mrf.mxu1 }
 0x1e9   : > { %v763_v14 = vadd.f32 %v716_v17, %v550_v16  ;;  %v2071_v16 = vld [vmem:[%s2067_s5 + $0x8] ss:$12 sps:$4 sm:$0xff]  }
 0x1ea   : > { %v718_v23 = vpop.f32.mrf.mxu0  ;;  %v1391_v34 = vpop.f32.mrf.mxu1 }
 0x1eb   : > { %v1250_v31 = vmul.f32 -1.442695, %v763_v14  ;;  %v770_v37 = vadd.f32 %v718_v23, %v551_v32  ;;  %v777_v14 = vadd.f32 %v1860_v62, %v757_v30 }
 0x1ec   : > { %v720_v33 = vpop.f32.mrf.mxu0  ;;  %v760_v36 = vpop.f32.mrf.mxu1 }
 0x1ed   : > { %1509 = vpow2.f32 %v1250_v31  ;;  %v1251_v38 = vmul.f32 -1.442695, %v770_v37  ;;  %v552_v33 = vunpack.c.l.bf16 %v2071_v16 }
 0x1ee   : > { %v721_v35 = vpop.f32.mrf.mxu0  ;;  %v1392_v22 = vpop.f32.mrf.mxu1 }
 0x1ef   : > { %1511 = vpow2.f32 %v1251_v38  ;;  %v1255_v22 = vld [vmem:[%s2067_s5 + $0xc] sm:$0xff] }
 0x1f0   : > { %v795_v23 = vunpack.c.l.bf16 %v1255_v22 }
 0x1fa   : > { %v1510_v39 = vpop.eup %1509 }
 0x1fb   : > { %v767_v40 = vadd.f32 1.0, %v1510_v39 }
 0x1fc   : > { %v1512_v41 = vpop.eup %1511 }
 0x1fd   : > { %1513 = vrcp.f32 %v767_v40  ;;  %v774_v17 = vadd.f32 1.0, %v1512_v41  ;;  %v2227_v41 = vmov 0  }
 0x1ff   : > { %1515 = vrcp.f32 %v774_v17 }
 0x20a   : > { %v1514_v34 = vpop.eup %1513 }
 0x20b   : > { %v778_v31 = vmul.f32 %v1514_v34, %v777_v14 }
 0x20c   : > { %v1516_v32 = vpop.eup %1515 }
 0x20d   : > { %v779_v35 = vadd.f32 %v778_v31, %v552_v33  ;;  %v781_v36 = vsub.f32 1.0, %v1516_v32  ;;  %v783_v39 = vmul.f32 %v1559_v0, %v1516_v32  ;;  %v2226_v0 = vmov 0.0  }
 0x20f   : > { %1517 = vtanh.f32 %v779_v35  ;;  %v796_v35 = vunpack.c.h.bf16 %v1255_v22 }
 0x21c   : > { %v1518_v37 = vpop.eup %1517 }
 0x21d   : > { %v782_v38 = vmul.f32 %v1518_v37, %v781_v36 }
 0x21f   : > { %v2077_v40 = vadd.f32 %v783_v39, %v782_v38 }
 0x221   : > { %v785_v30 = vpack.c.bf16 %v2077_v40, %v2077_v40 }
 0x223   : > { %788 = vst [vmem:[%s2082_s19] sm:$0xf] %v785_v30  ;;  %831 = vmatmul.mubr.bf16.vlgmr.msra.gmra.mxu0 %v785_v30  ;;  %1410 = vmatmul.mubr.bf16.vlgmr.msra.gmra.mxu1 %v785_v30 }
 0x224   : > { %915 = vmatpush1.bf16.msra.mxu0 %v1902_v7  ;;  %1414 = vmatpush3.bf16.msra.mxu1 %v1916_v20 }
 0x225   : > { %916 = vmatprep.subr.bf16.mxu0 %v1906_v18  ;;  %1415 = vmatprep.subr.bf16.mxu1 %v2226_v0 }
 0x226   : > { %946 = vmatprep.mubr.bf16.mxu0 %v2227_v41  ;;  %1429 = vmatprep.mubr.msk.bf16.mxu1 %vm1568_vm0, %v2226_v0 }
 0x228   : > { %917 = vmatpush1.bf16.msra.mxu0 %v1912_v19  ;;  %1416 = vmatpush3.bf16.msra.mxu1 %v1928_v24 }
 0x229   : > { %918 = vmatprep.subr.bf16.mxu0 %v1921_v21  ;;  %1417 = vmatprep.subr.bf16.mxu1 %v2226_v0 }
 0x22c   : > { %919 = vmatpush1.bf16.msra.mxu0 %v1934_v25  ;;  %1418 = vmatpush3.bf16.msra.mxu1 %v1946_v27 }
 0x22d   : > { %920 = vmatprep.subr.bf16.mxu0 %v1939_v26  ;;  %1419 = vmatprep.subr.bf16.mxu1 %v2226_v0 }
 0x230   : > { %921 = vmatpush1.bf16.msra.mxu0 %v1952_v28  ;;  %1420 = vmatpush3.bf16.msra.mxu1 %v1962_v63 }
 0x231   : > { %922 = vmatprep.subr.bf16.mxu0 %v1957_v29  ;;  %1421 = vmatprep.subr.bf16.mxu1 %v2226_v0 }
 0x234   : > { %923 = vmatpush1.bf16.msra.mxu0 %v1968_v1  ;;  %1422 = vmatpush3.bf16.msra.mxu1 %v1978_v3 }
 0x235   : > { %924 = vmatprep.subr.bf16.mxu0 %v1973_v2  ;;  %1423 = vmatprep.subr.bf16.mxu1 %v2226_v0 }
 0x238   : > { %925 = vmatpush1.bf16.msra.mxu0 %v1984_v4  ;;  %1424 = vmatpush3.bf16.msra.mxu1 %v1994_v8 }
 0x239   : > { %926 = vmatprep.subr.bf16.mxu0 %v1989_v5  ;;  %1425 = vmatprep.subr.bf16.mxu1 %v2226_v0 }
 0x23c   : > { %927 = vmatpush1.bf16.msra.mxu0 %v2000_v10  ;;  %1426 = vmatpush3.bf16.msra.mxu1 %v2010_v12 }
 0x23d   : > { %928 = vmatprep.subr.bf16.mxu0 %v2005_v11  ;;  %1427 = vmatprep.subr.bf16.mxu1 %v2226_v0 }
 0x240   : > { %929 = vmatpush1.bf16.msra.mxu0 %v2016_v9  ;;  %1428 = vmatpush3.bf16.msra.mxu1 %v2022_v13 }
 0x241   : > { %1030 = vmatprep.subr.bf16.mxu0 %v1898_v6  ;;  %1433 = vmatprep.subr.bf16.mxu1 %v2226_v0 }
 0x2e3   : > { %v832_v15 = vpop.f32.mrf.mxu0  ;;  %v873_v17 = vpop.f32.mrf.mxu1 }
 0x2e4   : > { %v879_v14 = vadd.f32 %v832_v15, %v795_v23  ;;  %v797_v23 = vunpack.c.h.bf16 %v2071_v16  ;;  %v893_v15 = vadd.f32 %v1860_v62, %v873_v17 }
 0x2e5   : > { %v834_v33 = vpop.f32.mrf.mxu0  ;;  %v1411_v34 = vpop.f32.mrf.mxu1 }
 0x2e6   : > { %v1257_v31 = vmul.f32 -1.442695, %v879_v14  ;;  %v886_v39 = vadd.f32 %v834_v33, %v796_v35 }
 0x2e7   : > { %v836_v32 = vpop.f32.mrf.mxu0  ;;  %v876_v36 = vpop.f32.mrf.mxu1 }
 0x2e8   : > { %1519 = vpow2.f32 %v1257_v31  ;;  %v1258_v30 = vmul.f32 -1.442695, %v886_v39 }
 0x2e9   : > { %v837_v37 = vpop.f32.mrf.mxu0  ;;  %v1412_v38 = vpop.f32.mrf.mxu1 }
 0x2ea   : > { %1521 = vpow2.f32 %v1258_v30  ;;  %v1273_v30 = vld [vmem:[%s2067_s5 + $0x24] sm:$0xff] }
 0x2f5   : > { %v1520_v6 = vpop.eup %1519 }
 0x2f6   : > { %v883_v42 = vadd.f32 1.0, %v1520_v6  ;;  %v1027_v6 = vunpack.c.l.bf16 %v1273_v30 }
 0x2f7   : > { %v1522_v43 = vpop.eup %1521 }
 0x2f8   : > { %1523 = vrcp.f32 %v883_v42  ;;  %v890_v44 = vadd.f32 1.0, %v1522_v43  ;;  %v1264_v43 = vld [vmem:[%s2067_s5 + $0x18] sm:$0xff] }
 0x2fa   : > { %1525 = vrcp.f32 %v890_v44  ;;  %v911_v44 = vunpack.c.l.bf16 %v1264_v43 }
 0x305   : > { %v1524_v14 = vpop.eup %1523 }
 0x306   : > { %v894_v22 = vmul.f32 %v1524_v14, %v893_v15 }
 0x307   : > { %v1526_v31 = vpop.eup %1525 }
 0x308   : > { %v895_v34 = vadd.f32 %v894_v22, %v797_v23  ;;  %v897_v32 = vsub.f32 1.0, %v1526_v31  ;;  %v899_v36 = vmul.f32 %v1526_v31, %v2077_v40 }
 0x30a   : > { %1527 = vtanh.f32 %v895_v34 }
 0x317   : > { %v1528_v33 = vpop.eup %1527 }
 0x318   : > { %v898_v35 = vmul.f32 %v1528_v33, %v897_v32  ;;  %v1028_v32 = vunpack.c.h.bf16 %v1273_v30 }
 0x31a   : > { %v2126_v37 = vadd.f32 %v899_v36, %v898_v35 }
 0x31c   : > { %v901_v42 = vpack.c.bf16 %v2126_v37, %v2126_v37 }
 0x31e   : > { %1261 = vst [vmem:[%s2082_s19 + $0x4] sm:$0xf] %v901_v42  ;;  %947 = vmatmul.mubr.bf16.vlgmr.msra.gmra.mxu0 %v901_v42  ;;  %1430 = vmatmul.mubr.bf16.vlgmr.msra.gmra.mxu1 %v901_v42 }
 0x31f   : > { %1031 = vmatpush1.bf16.msra.mxu0 %v1902_v7  ;;  %1434 = vmatpush3.bf16.msra.mxu1 %v1916_v20 }
 0x320   : > { %1032 = vmatprep.subr.bf16.mxu0 %v1906_v18  ;;  %1435 = vmatprep.subr.bf16.mxu1 %v2226_v0 }
 0x321   : > { %1062 = vmatprep.mubr.bf16.mxu0 %v2227_v41  ;;  %1449 = vmatprep.mubr.msk.bf16.mxu1 %vm1568_vm0, %v2226_v0 }
 0x323   : > { %1033 = vmatpush1.bf16.msra.mxu0 %v1912_v19  ;;  %1436 = vmatpush3.bf16.msra.mxu1 %v1928_v24 }
 0x324   : > { %1034 = vmatprep.subr.bf16.mxu0 %v1921_v21  ;;  %1437 = vmatprep.subr.bf16.mxu1 %v2226_v0 }
 0x327   : > { %1035 = vmatpush1.bf16.msra.mxu0 %v1934_v25  ;;  %1438 = vmatpush3.bf16.msra.mxu1 %v1946_v27  ;;  %v912_v25 = vunpack.c.h.bf16 %v1264_v43 }
 0x328   : > { %1036 = vmatprep.subr.bf16.mxu0 %v1939_v26  ;;  %1439 = vmatprep.subr.bf16.mxu1 %v2226_v0 }
 0x32b   : > { %1037 = vmatpush1.bf16.msra.mxu0 %v1952_v28  ;;  %1440 = vmatpush3.bf16.msra.mxu1 %v1962_v63 }
 0x32c   : > { %1038 = vmatprep.subr.bf16.mxu0 %v1957_v29  ;;  %1441 = vmatprep.subr.bf16.mxu1 %v2226_v0 }
 0x32f   : > { %1039 = vmatpush1.bf16.msra.mxu0 %v1968_v1  ;;  %1442 = vmatpush3.bf16.msra.mxu1 %v1978_v3 }
 0x330   : > { %1040 = vmatprep.subr.bf16.mxu0 %v1973_v2  ;;  %1443 = vmatprep.subr.bf16.mxu1 %v2226_v0 }
 0x333   : > { %1041 = vmatpush1.bf16.msra.mxu0 %v1984_v4  ;;  %1444 = vmatpush3.bf16.msra.mxu1 %v1994_v8 }
 0x334   : > { %1042 = vmatprep.subr.bf16.mxu0 %v1989_v5  ;;  %1445 = vmatprep.subr.bf16.mxu1 %v2226_v0  ;;  %v1265_v5 = vld [vmem:[%s2067_s5 + $0x20] ss:$12 sps:$4 sm:$0xff]  }
 0x337   : > { %1043 = vmatpush1.bf16.msra.mxu0 %v2000_v10  ;;  %1446 = vmatpush3.bf16.msra.mxu1 %v2010_v12  ;;  %v913_v10 = vunpack.c.l.bf16 %v1265_v5 }
 0x338   : > { %1044 = vmatprep.subr.bf16.mxu0 %v2005_v11  ;;  %1447 = vmatprep.subr.bf16.mxu1 %v2226_v0 }
 0x33b   : > { %1045 = vmatpush1.bf16.msra.mxu0 %v2016_v9  ;;  %1448 = vmatpush3.bf16.msra.mxu1 %v2022_v13 }
 0x3de   : > { %v948_v7 = vpop.f32.mrf.mxu0  ;;  %v989_v18 = vpop.f32.mrf.mxu1 }
 0x3df   : > { %v995_v19 = vadd.f32 %v948_v7, %v911_v44  ;;  %v1009_v11 = vadd.f32 %v1860_v62, %v989_v18 }
 0x3e0   : > { %v950_v20 = vpop.f32.mrf.mxu0  ;;  %v1431_v21 = vpop.f32.mrf.mxu1 }
 0x3e1   : > { %v1266_v24 = vmul.f32 -1.442695, %v995_v19  ;;  %v1002_v63 = vadd.f32 %v950_v20, %v912_v25  ;;  %v1029_v20 = vunpack.c.h.bf16 %v1265_v5 }
 0x3e2   : > { %v952_v26 = vpop.f32.mrf.mxu0  ;;  %v992_v27 = vpop.f32.mrf.mxu1 }
 0x3e3   : > { %1529 = vpow2.f32 %v1266_v24  ;;  %v1267_v1 = vmul.f32 -1.442695, %v1002_v63 }
 0x3e4   : > { %v953_v28 = vpop.f32.mrf.mxu0  ;;  %v1432_v29 = vpop.f32.mrf.mxu1 }
 0x3e5   : > { %1531 = vpow2.f32 %v1267_v1 }
 0x3f0   : > { %v1530_v2 = vpop.eup %1529 }
 0x3f1   : > { %v999_v3 = vadd.f32 1.0, %v1530_v2 }
 0x3f2   : > { %v1532_v4 = vpop.eup %1531 }
 0x3f3   : > { %1533 = vrcp.f32 %v999_v3  ;;  %v1006_v8 = vadd.f32 1.0, %v1532_v4 }
 0x3f5   : > { %1535 = vrcp.f32 %v1006_v8 }
 0x400   : > { %v1534_v12 = vpop.eup %1533 }
 0x401   : > { %v1010_v9 = vmul.f32 %v1534_v12, %v1009_v11 }
 0x402   : > { %v1536_v16 = vpop.eup %1535 }
 0x403   : > { %v1011_v13 = vadd.f32 %v1010_v9, %v913_v10  ;;  %v1013_v40 = vsub.f32 1.0, %v1536_v16  ;;  %v1015_v17 = vmul.f32 %v1536_v16, %v2126_v37 }
 0x405   : > { %1537 = vtanh.f32 %v1011_v13 }
 0x412   : > { %v1538_v0 = vpop.eup %1537 }
 0x413   : > { %v1014_v41 = vmul.f32 %v1538_v0, %v1013_v40 }
 0x415   : > { %v1016_v38 = vadd.f32 %v1015_v17, %v1014_v41 }
 0x417   : > { %v1017_v39 = vpack.c.bf16 %v1016_v38, %v1016_v38 }
 0x419   : > { %1270 = vst [vmem:[%s2082_s19 + $0x8] sm:$0xf] %v1017_v39  ;;  %1063 = vmatmul.mubr.bf16.vlgmr.msra.gmra.mxu0 %v1017_v39  ;;  %1450 = vmatmul.mubr.bf16.vlgmr.msra.gmra.mxu1 %v1017_v39 }
 0x4d9   : > { %v1064_v23 = vpop.f32.mrf.mxu0  ;;  %v1105_v15 = vpop.f32.mrf.mxu1 }
 0x4da   : > { %v1111_v14 = vadd.f32 %v1064_v23, %v1027_v6  ;;  %v1125_v21 = vadd.f32 %v1860_v62, %v1105_v15 }
 0x4db   : > { %v1066_v22 = vpop.f32.mrf.mxu0  ;;  %v1451_v34 = vpop.f32.mrf.mxu1 }
 0x4dc   : > { %v1275_v31 = vmul.f32 -1.442695, %v1111_v14  ;;  %v1118_v37 = vadd.f32 %v1066_v22, %v1028_v32 }
 0x4dd   : > { %v1068_v33 = vpop.f32.mrf.mxu0  ;;  %v1108_v35 = vpop.f32.mrf.mxu1 }
 0x4de   : > { %1539 = vpow2.f32 %v1275_v31  ;;  %v1276_v43 = vmul.f32 -1.442695, %v1118_v37 }
 0x4df   : > { %v1069_v36 = vpop.f32.mrf.mxu0  ;;  %v1452_v42 = vpop.f32.mrf.mxu1 }
 0x4e0   : > { %1541 = vpow2.f32 %v1276_v43 }
 0x4eb   : > { %v1540_v44 = vpop.eup %1539 }
 0x4ec   : > { %v1115_v7 = vadd.f32 1.0, %v1540_v44 }
 0x4ed   : > { %v1542_v18 = vpop.eup %1541 }
 0x4ee   : > { %1543 = vrcp.f32 %v1115_v7  ;;  %v1122_v19 = vadd.f32 1.0, %v1542_v18 }
 0x4f0   : > { %1545 = vrcp.f32 %v1122_v19 }
 0x4fb   : > { %v1544_v24 = vpop.eup %1543 }
 0x4fc   : > { %v1126_v25 = vmul.f32 %v1544_v24, %v1125_v21 }
 0x4fd   : > { %v1546_v27 = vpop.eup %1545 }
 0x4fe   : > { %v1127_v26 = vadd.f32 %v1126_v25, %v1029_v20  ;;  %v1129_v28 = vsub.f32 1.0, %v1546_v27  ;;  %v1131_v1 = vmul.f32 %v1546_v27, %v1016_v38 }
 0x500   : > { %1547 = vtanh.f32 %v1127_v26 }
 0x50d   : > { %v1548_v29 = vpop.eup %1547 }
 0x50e   : > { %v1130_v63 = vmul.f32 %v1548_v29, %v1129_v28 }
 0x510   : > { %v1132_v0 = vadd.f32 %v1131_v1, %v1130_v63   ;;  %541 = sbr.rel (!%p539_p0) target bundleno = 262 (0x106), region = 63 }
 0x512   : > { %v1133_v2 = vpack.c.bf16 %v1132_v0, %v1132_v0 }
 0x514   : > { %1279 = vst [vmem:[%s2082_s19 + $0xc] sm:$0xf] %v1133_v2 }

</bundles_post_ra>
